<compile_context>
chip_gen: v5e
topology: v5e:2x2
jax: 0.10.0
libtpu: 0.0.40
codegen_flags: <defaults>
</compile_context>

<pallas_src>
import jax
import jax.numpy as jnp
from jax.experimental import pallas as pl
from jax.experimental.pallas import tpu as pltpu

C_IN = 768
C_MID = 256
C_OUT = 256


def _sigmoid_eup(z):
    # sigmoid(z) = 1 / (1 + exp(-z)); exp + approx-reciprocal both run on EUP.
    return pl.reciprocal(1.0 + jnp.exp(-z), approx=True)


def _fused_kernel(x_ref, w1_ref, w2_ref, b_ref, o_ref):
    # (C, L) layout; weights are in native PyTorch (C_out, C_in) layout.
    #   x_ref:  (C_IN,  tl)        f32  (cast to bf16 here, hidden under MXU)
    #   w1_ref: (C_MID, C_IN)      bf16
    #   w2_ref: (C_OUT, C_MID)     bf16
    #   b_ref:  (2, C_MID, 1)      f32  (b1 = b_ref[0], b2 = b_ref[1])
    #   o_ref:  (C_OUT, tl)        f32
    x_bf16 = x_ref[...].astype(jnp.bfloat16)
    h = jnp.dot(w1_ref[...], x_bf16, preferred_element_type=jnp.float32)
    h = _sigmoid_eup(h + b_ref[0])                       # f32 elementwise
    y = jnp.dot(w2_ref[...], h.astype(w2_ref.dtype),
                preferred_element_type=jnp.float32)
    o_ref[...] = _sigmoid_eup(y + b_ref[1]).astype(o_ref.dtype)


def _pick_tl(L):
    # Largest tile in {1024,512,256,128} that divides L and yields >= 2 grid
    # steps (so v7x megacore can shard + DMA overlaps compute); else whole L.
    for tl in (1024, 512, 256, 128):
        if L % tl == 0 and L // tl >= 2:
            return tl
    return L


def model_forward(x_ncl, w1, b1, w2, b2, *, tl=None):
    """x_ncl: (1, C_IN, L) f32.  w1:(C_MID,C_IN) bf16, w2:(C_OUT,C_MID) bf16,
    b1:(C_MID,) f32, b2:(C_OUT,) f32.  Returns (1, C_OUT, L) f32."""
    n, c_in, L = x_ncl.shape
    assert n == 1 and c_in == C_IN
    if tl is None:
        tl = _pick_tl(L)
    assert L % tl == 0 and (tl % 128 == 0 or tl == L)

    x_cl = x_ncl[0]                                   # (C_IN, L), stays f32
    b_packed = jnp.stack([b1, b2]).reshape(2, C_MID, 1).astype(jnp.float32)

    grid_l = L // tl
    flops = 2 * L * C_MID * C_IN + 2 * L * C_OUT * C_MID
    transcendentals = L * (C_MID + C_OUT)             # one exp per sigmoid elem
    bytes_accessed = (C_IN * L * 4                    # x (f32 in)
                      + C_OUT * L * 4                 # output (f32)
                      + (C_MID * C_IN + C_OUT * C_MID) * 2  # bf16 weights
                      + 2 * C_MID * 4)                # biases

    out_cl = pl.pallas_call(
        _fused_kernel,
        out_shape=jax.ShapeDtypeStruct((C_OUT, L), jnp.float32),
        grid_spec=pltpu.PrefetchScalarGridSpec(
            num_scalar_prefetch=0,
            grid=(grid_l,),
            in_specs=[
                pl.BlockSpec((C_IN, tl), lambda i: (0, i)),
                pl.BlockSpec((C_MID, C_IN), lambda i: (0, 0)),
                pl.BlockSpec((C_OUT, C_MID), lambda i: (0, 0)),
                pl.BlockSpec((2, C_MID, 1), lambda i: (0, 0, 0)),
            ],
            out_specs=pl.BlockSpec((C_OUT, tl), lambda i: (0, i)),
        ),
        compiler_params=pltpu.CompilerParams(
            dimension_semantics=("parallel",)),
        cost_estimate=pl.CostEstimate(
            flops=flops,
            transcendentals=transcendentals,
            bytes_accessed=bytes_accessed),
    )(x_cl, w1, w2, b_packed)

    return out_cl[None, :, :]                         # (1, C_OUT, L)


def _init_params(key):
    # Deterministic init mimicking PyTorch's Conv1d default (uniform in
    # +/- 1/sqrt(fan_in)); kernel_size=1 so weights are (C_out, C_in).
    # Weights are stored in bf16 ONCE here (not cast per call).
    k1, k2, k3, k4 = jax.random.split(key, 4)
    bound1 = 1.0 / jnp.sqrt(C_IN)
    bound2 = 1.0 / jnp.sqrt(C_MID)
    w1 = jax.random.uniform(k1, (C_MID, C_IN), jnp.float32, -bound1, bound1)
    b1 = jax.random.uniform(k2, (C_MID,), jnp.float32, -bound1, bound1)
    w2 = jax.random.uniform(k3, (C_OUT, C_MID), jnp.float32, -bound2, bound2)
    b2 = jax.random.uniform(k4, (C_OUT,), jnp.float32, -bound2, bound2)
    return w1.astype(jnp.bfloat16), b1, w2.astype(jnp.bfloat16), b2


def _reference(x_ncl, w1, b1, w2, b2):
    # Pure-JAX f32 reference of the PyTorch forward (1x1 conv == channel
    # matmul), using the same (bf16-stored) weight values.
    x = x_ncl[0]                                              # (C_IN, L)
    v1 = w1.astype(jnp.float32) @ x + b1[:, None]             # (C_MID, L)
    v2 = jax.nn.sigmoid(v1)
    v3 = w2.astype(jnp.float32) @ v2 + b2[:, None]            # (C_OUT, L)
    v4 = jax.nn.sigmoid(v3)
    return v4[None, :, :]


if __name__ == "__main__":
    key = jax.random.PRNGKey(0)
    kx, kp = jax.random.split(key)

    L = 256
    x1 = jax.random.normal(kx, (1, C_IN, L), jnp.float32)
    w1, b1, w2, b2 = _init_params(kp)

    out = model_forward(x1, w1, b1, w2, b2)
    out = jax.block_until_ready(out)

    ref = _reference(x1, w1, b1, w2, b2)
    assert out.shape == (1, C_OUT, L)
    # bf16 matmul operands + approx reciprocal: tolerance loosened accordingly.
    assert jnp.allclose(out, ref, atol=1e-2, rtol=1e-2)

    print("KERNEL_OK")
</pallas_src>

<mosaic_0001>
module attributes {stable_mosaic.version = 11 : i64} {
  func.func @_fused_kernel(%arg0: i32, %arg1: memref<768x128xf32, #tpu.memory_space<vmem>>, %arg2: memref<256x768xbf16, #tpu.memory_space<vmem>>, %arg3: memref<256x256xbf16, #tpu.memory_space<vmem>>, %arg4: memref<2x256x1xf32, #tpu.memory_space<vmem>>, %arg5: memref<256x128xf32, #tpu.memory_space<vmem>>) attributes {dimension_semantics = [#tpu.dimension_semantics<parallel>], iteration_bounds = array<i64: 2>, scalar_prefetch = 0 : i64, scratch_operands = 0 : i64, tpu.core_type = #tpu.core_type<tc>, window_params = [{transform_indices = @transform_0, window_bounds = array<i64: 768, 128>}, {pipeline_mode = #tpu.pipeline_mode<synchronous>, transform_indices = @transform_1, window_bounds = array<i64: 256, 768>}, {pipeline_mode = #tpu.pipeline_mode<synchronous>, transform_indices = @transform_2, window_bounds = array<i64: 256, 256>}, {pipeline_mode = #tpu.pipeline_mode<synchronous>, transform_indices = @transform_3, window_bounds = array<i64: 2, 256, 1>}, {transform_indices = @transform_4, window_bounds = array<i64: 256, 128>}]} {
    %c0 = arith.constant 0 : index
    %c0_0 = arith.constant 0 : index
    %0 = vector.load %arg1[%c0, %c0_0] : memref<768x128xf32, #tpu.memory_space<vmem>>, vector<768x128xf32>
    %1 = arith.truncf %0 : vector<768x128xf32> to vector<768x128xbf16>
    %c0_1 = arith.constant 0 : index
    %c0_2 = arith.constant 0 : index
    %2 = vector.load %arg2[%c0_1, %c0_2] : memref<256x768xbf16, #tpu.memory_space<vmem>>, vector<256x768xbf16>
    %cst = arith.constant dense<0.000000e+00> : vector<256x128xf32>
    %3 = tpu.matmul %2, %1, %cst {dimension_numbers = #tpu.dot_dimension_numbers<[1], [0], [0], [1], [0, 0, 1, 1], [], []>} : vector<256x768xbf16>, vector<768x128xbf16>, vector<256x128xf32> -> vector<256x128xf32>
    %c0_3 = arith.constant 0 : index
    %c0_4 = arith.constant 0 : index
    %c0_5 = arith.constant 0 : index
    %4 = vector.load %arg4[%c0_3, %c0_4, %c0_5] : memref<2x256x1xf32, #tpu.memory_space<vmem>>, vector<1x256x1xf32>
    %5 = vector.shape_cast %4 : vector<1x256x1xf32> to vector<256x1xf32>
    %6 = vector.broadcast %5 : vector<256x1xf32> to vector<256x128xf32>
    %7 = arith.addf %3, %6 : vector<256x128xf32>
    %cst_6 = arith.constant 0.000000e+00 : f32
    %8 = vector.broadcast %cst_6 : f32 to vector<256x128xf32>
    %9 = arith.subf %8, %7 : vector<256x128xf32>
    %10 = math.exp %9 : vector<256x128xf32>
    %cst_7 = arith.constant 1.000000e+00 : f32
    %11 = vector.broadcast %cst_7 : f32 to vector<256x128xf32>
    %12 = arith.addf %11, %10 : vector<256x128xf32>
    %13 = tpu.reciprocal %12 {approx = true} : vector<256x128xf32> -> vector<256x128xf32>
    %c0_8 = arith.constant 0 : index
    %c0_9 = arith.constant 0 : index
    %14 = vector.load %arg3[%c0_8, %c0_9] : memref<256x256xbf16, #tpu.memory_space<vmem>>, vector<256x256xbf16>
    %15 = arith.truncf %13 : vector<256x128xf32> to vector<256x128xbf16>
    %cst_10 = arith.constant dense<0.000000e+00> : vector<256x128xf32>
    %16 = tpu.matmul %14, %15, %cst_10 {dimension_numbers = #tpu.dot_dimension_numbers<[1], [0], [0], [1], [0, 0, 1, 1], [], []>} : vector<256x256xbf16>, vector<256x128xbf16>, vector<256x128xf32> -> vector<256x128xf32>
    %c1 = arith.constant 1 : index
    %c0_11 = arith.constant 0 : index
    %c0_12 = arith.constant 0 : index
    %17 = vector.load %arg4[%c1, %c0_11, %c0_12] : memref<2x256x1xf32, #tpu.memory_space<vmem>>, vector<1x256x1xf32>
    %18 = vector.shape_cast %17 : vector<1x256x1xf32> to vector<256x1xf32>
    %19 = vector.broadcast %18 : vector<256x1xf32> to vector<256x128xf32>
    %20 = arith.addf %16, %19 : vector<256x128xf32>
    %cst_13 = arith.constant 0.000000e+00 : f32
    %21 = vector.broadcast %cst_13 : f32 to vector<256x128xf32>
    %22 = arith.subf %21, %20 : vector<256x128xf32>
    %23 = math.exp %22 : vector<256x128xf32>
    %cst_14 = arith.constant 1.000000e+00 : f32
    %24 = vector.broadcast %cst_14 : f32 to vector<256x128xf32>
    %25 = arith.addf %24, %23 : vector<256x128xf32>
    %26 = tpu.reciprocal %25 {approx = true} : vector<256x128xf32> -> vector<256x128xf32>
    %c0_15 = arith.constant 0 : index
    %c0_16 = arith.constant 0 : index
    %27 = vector.load %arg5[%c0_15, %c0_16] : memref<256x128xf32, #tpu.memory_space<vmem>>, vector<256x128xf32>
    tpu.vector_store %arg5[%c0_15, %c0_16], %26 {strides = array<i32>} : memref<256x128xf32, #tpu.memory_space<vmem>>, vector<256x128xf32>,
    return
  }
  func.func @transform_0(%arg0: i32) -> (i32, i32) {
    %c0_i32 = arith.constant 0 : i32
    %c0_i32_0 = arith.constant 0 : i32
    return %c0_i32, %arg0 : i32, i32
  }
  func.func @transform_1(%arg0: i32) -> (i32, i32) {
    %c0_i32 = arith.constant 0 : i32
    %c0_i32_0 = arith.constant 0 : i32
    %c0_i32_1 = arith.constant 0 : i32
    return %c0_i32, %c0_i32_0 : i32, i32
  }
  func.func @transform_2(%arg0: i32) -> (i32, i32) {
    %c0_i32 = arith.constant 0 : i32
    %c0_i32_0 = arith.constant 0 : i32
    %c0_i32_1 = arith.constant 0 : i32
    return %c0_i32, %c0_i32_0 : i32, i32
  }
  func.func @transform_3(%arg0: i32) -> (i32, i32, i32) {
    %c0_i32 = arith.constant 0 : i32
    %c0_i32_0 = arith.constant 0 : i32
    %c0_i32_1 = arith.constant 0 : i32
    %c0_i32_2 = arith.constant 0 : i32
    return %c0_i32, %c0_i32_0, %c0_i32_1 : i32, i32, i32
  }
  func.func @transform_4(%arg0: i32) -> (i32, i32) {
    %c0_i32 = arith.constant 0 : i32
    %c0_i32_0 = arith.constant 0 : i32
    return %c0_i32, %arg0 : i32, i32
  }
}

</mosaic_0001>

<bundles_post_ra>
// kernel: tpu_custom_call.1
= control target key start
LH: loop header
LB: loop body
LE: loop exit
PB: predicated region body
PF: predicated region fallthrough
CT: control target
= control target key end

     0   :  { %9 = vsyncpa [#allocation3], 0  ;;  %s4918_s0 = inlined_call_operand.hbm [shape: f32[768,256], index: 0, kind: input, shape index: {}]   ;;  %s4919_s1 = inlined_call_operand.hbm [shape: bf16[256,768], index: 1, kind: input, shape index: {}]   ;;  %s4920_s2 = inlined_call_operand.vmem [shape: bf16[256,256], index: 2, kind: input, shape index: {}]   ;;  %s4921_s3 = inlined_call_operand.vmem [shape: f32[2,256,1], index: 3, kind: input, shape index: {}]   ;;  %s4922_s4 = inlined_call_operand.hbm [shape: f32[256,256], index: 4, kind: output, shape index: {}]  }
   0x1   :  { %11 = vsyncpa [#allocation3 + $0x1], 0 }
   0x2   :  { %12 = vsyncpa [#allocation6], 0 }
   0x3   :  { %13 = vsyncpa [#allocation4], 0 }
   0x4   :  { %15 = vsyncpa [#allocation4 + $0x1], 0  ;;  %s3887_s15 = smov 0   ;;  %s3889_s16 = smov 0  }
   0x5   :  { %s3891_s17 = smov 0   ;;  %s3893_s18 = smov 0  }
   0x6 LB: > { %s3908_s19 = sadd.s32 4294967295, %s3850_s18   ;;  %s2709_s20 = sadd.s32 4294967294, %s3850_s18   ;;  %s3850_s18 = sphi %s3893_s18, %s4948_s18   ;;  %s3846_s17 = sphi %s3891_s17, %s4947_s17   ;;  %s3842_s16 = sphi %s3889_s16, %s4946_s16   ;;  %s3838_s15 = sphi %s3887_s15, %s4945_s15  }
   0x7   : > { %p41_p0 = scmp.ne.s32.totalorder %s3842_s16, %s3838_s15  ;;  %p42_p1 = scmp.eq.s32.totalorder %s3908_s19, 0 }
   0x8   : > { %p128_p2 = scmp.eq.s32.totalorder %s3908_s19, 1  ;;  %p134_p3 = scmp.eq.s32.totalorder %s2709_s20, 1 }
   0x9   : > { %p3917_p4 = por %p42_p1, %p41_p0  ;;  %p2710_p5 = scmp.ge.s32.totalorder %s3850_s18, 1 }
   0xa   : > { %p3922_p6 = por %p134_p3, %p41_p0  ;;  %p141_p7 = scmp.lt.s32.totalorder %s3850_s18, 3 }
   0xb   : > { %s152_s25 = sshll.u32 %s4919_s1, 4  ;;  %s3852_s27 = smov [#allocation5]   ;;  %s153_s25 = int_to_ptr.hbm [resolvable:$true] %s152_s25 }
   0xc   : > { %p3930_p8 = pnand %p2710_p5, %p141_p7  ;;  %s154_s28 = sshll.u32 %s3852_s27, 4  ;;  %s155_s28 = int_to_ptr.vmem [resolvable:$true] %s154_s28 }
   0xd   : > { %s3940_s29 = sadd.s32 1, %s3850_s18   ;;  %s3853_s30 = smov 384  }
   0xe   : > { %p3403_p9 = pneg %p3930_p8  ;;  %s3854_s5 = smov 24  }
   0xf   : > { %s25_s6 = ssub.s32 %s3850_s18, %s3940_s29  ;;  %s28_s7 = sadd.s32 1, %s3846_s17 }
  0x10   : > { %p3404_p10 = pnand %p3403_p9, %p42_p1  ;;  %p26_p12 = scmp.eq.s32.totalorder %s25_s6, 0 }
  0x11   : > { %p35_p13 = scmp.ne.s32.totalorder %s3846_s17, %s3842_s16  ;;  %p36_p0 = scmp.eq.s32.totalorder %s3850_s18, 0 }
  0x12   : > { %3406 = dma.hbm_to_vmem [thread:$0]  (!%p3404_p10), %s153_s25, 12288, %s155_s28, [#allocation6], %s3853_s30, %s3853_s30, %s3854_s5  }
  0x13   : > { %p3416_p3 = scmp.lt.s32.totalorder %s3850_s18, 2  ;;  %p37_p5 = por %p36_p0, %p35_p13 }
  0x14   : > { %s3950_s8 = scalar_select %p26_p12, %s3846_s17, %s28_s7  }
  0x15   : > { %p3954_p7 = por %p128_p2, %p35_p13  ;;  %s174_s10 = sand.u32 1, %s3846_s17  }
  0x16   : > { %s2713_s11 = sshll.u32 %s3850_s18, 3  ;;  %s3393_s12 = smul.u32 768, %s174_s10 }
  0x17   : > { %s182_s20 = scalar_lea.hbm %s4918_s0, %s2713_s11  ;;  %p3963_p9 = pnand %p3416_p3, %p37_p5 }
  0x18   : > { %s183_s24 = sshll.u32 %s182_s20, 4  ;;  %s178_s25 = scalar_lea.vmem [#allocation2], %s3393_s12  ;;  %s184_s24 = int_to_ptr.hbm [resolvable:$true] %s183_s24 }
  0x19   : > { %s185_s27 = sshll.u32 %s178_s25, 4  ;;  %s175_s28 = scalar_lea.sflag [#allocation3], %s174_s10  ;;  %s186_s27 = int_to_ptr.vmem [resolvable:$true] %s185_s27 }
  0x1a   : > { %s3750_s30 = sshra.s32 %s184_s24, 4  ;;  %p3754_p10 = pneg %p3963_p9  ;;  %s3751_s30 = int_to_ptr.hbm [resolvable:$true] %s3750_s30 }
  0x1b   : > { %s3752_s5 = scalar_lea.hbm %s3751_s30, 768  ;;  %s3757_s11 = scalar_lea.hbm %s4918_s0, 1536 }
  0x1c   : > { %p3753_p2 = scmp.ne.s32.totalorder %s3751_s30, %s3752_s5  ;;  %p3758_p0 = scmp.lt.s32.totalorder %s3751_s30, %s4918_s0 }
  0x1d   : > { %p3759_p3 = scmp.lt.s32.totalorder %s3757_s11, %s3752_s5 }
  0x1e   : > { %p3755_p12 = pnand %p3754_p10, %p3753_p2 }
  0x1f   : > { %p3760_p5 = por %p3759_p3, %p3758_p0 }
  0x20   : > { %p3756_p13 = pneg %p3755_p12 }
  0x22   : > { %p3761_p11 = pnand %p3760_p5, %p3756_p13 }
  0x24   : > { %3764 = shalt.err (!%p3761_p11)
}
  0x25   : > { %s3855_s10 = smov 256   ;;  %s3856_s12 = smov 128  }
  0x26   : > { %s3857_s20 = smov 8   ;;  %197 = sbr.rel (%p3930_p8) target bundleno = 1180 (0x49c), region = 36 }
  0x27   : > { %3410 = dma.hbm_to_vmem [thread:$0]  (!%p3963_p9), %s184_s24, 12288, %s186_s27, %s175_s28, %s3855_s10, %s3856_s12, %s3857_s20  }
  0x2b   : > { %s3980_s25 = sand.u32 1, %s3842_s16  }
  0x2c   : > { %s3394_s30 = smul.u32 768, %s3980_s25  ;;  %s200_s5 = scalar_lea.sflag [#allocation3], %s3980_s25 }
  0x2e   : > { %s3984_s6 = scalar_lea.vmem [#allocation2], %s3394_s30 }
  0x2f   : > { %3825 = dma.done.wait (%p3917_p4), %s200_s5, 12288  }
  0x30   : > { %3827 = vsyncadd (%p3917_p4), %s200_s5, 4294955008 }
  0x31   : > { %3829 = dma.done.wait (%p42_p1), [#allocation6], 12288  }
  0x32   : > { %3831 = vsyncadd (%p42_p1), [#allocation6], 4294955008  ;;  %v3858_v0 = vmov 0   ;;  %v504_v1 = vld [vmem:[%s4921_s3 + $0xf0] sm:$0xff]  ;;  %v249_v4 = vld [vmem:[%s3984_s6 + $0x78] sm:$0xff]  ;;  %s2716_s12 = sshll.u32 %s3980_s25, 8 }
  0x33   : > { %3462 = vset.pattern.permute.xlu1 %v3858_v0  ;;  %3461 = vset.pattern.permute.xlu0 %v3858_v0  ;;  %v488_v2 = vld [vmem:[%s4921_s3 + $0x70] sm:$0xff]  ;;  %v265_v6 = vld [vmem:[%s3984_s6 + $0xf8] sm:$0xff]  ;;  %v486_v11 = vld [vmem:[%s4921_s3 + $0x60] sm:$0xff]  ;;  %s4794_s23 = scalar_lea.vmem [#allocation7], %s2716_s12  ;;  %s3262_s7 = sshll.u32 %s3908_s19, 3 }
  0x34   : > { %3463 = vset.pattern.permute.xlu2 %v3858_v0  ;;  %v248_v3 = vld [vmem:[%s3984_s6 + $0x70] sm:$0xff]  ;;  %658 = vperm.xlu1 %3462, %v504_v1   ;;  %v281_v10 = vld [vmem:[%s3984_s6 + $0x178] sm:$0xff]  ;;  %v246_v15 = vld [vmem:[%s3984_s6 + $0x60] sm:$0xff]  ;;  %s2622_s14 = scalar_lea.hbm %s4922_s4, %s3262_s7  ;;  %s2623_s10 = sshll.u32 %s4794_s23, 4  ;;  %s2624_s10 = int_to_ptr.vmem [resolvable:$true] %s2623_s10 }
  0x35   : > { %578 = vperm.xlu0 %3461, %v488_v2   ;;  %v264_v5 = vld [vmem:[%s3984_s6 + $0xf0] sm:$0xff]  ;;  %v337_v7 = vpack.c.bf16 %v249_v4, %v248_v3  ;;  %568 = vperm.xlu2 %3463, %v486_v11   ;;  %v297_v14 = vld [vmem:[%s3984_s6 + $0x1f8] sm:$0xff]  ;;  %v247_v17 = vld [vmem:[%s3984_s6 + $0x68] sm:$0xff]  ;;  %s2625_s12 = sshll.u32 %s2622_s14, 4  ;;  %s2612_s20 = scalar_lea.sflag [#allocation4], %s3980_s25  ;;  %s2626_s12 = int_to_ptr.hbm [resolvable:$true] %s2625_s12 }
  0x36   : > { %v345_v8 = vpack.c.bf16 %v265_v6, %v264_v5  ;;  %v280_v9 = vld [vmem:[%s3984_s6 + $0x170] sm:$0xff]  ;;  %v262_v18 = vld [vmem:[%s3984_s6 + $0xe0] sm:$0xff]  ;;  %v263_v19 = vld [vmem:[%s3984_s6 + $0xe8] sm:$0xff]  ;;  %v336_v20 = vpack.c.bf16 %v247_v17, %v246_v15  ;;  %s3794_s30 = sshra.s32 %s2626_s12, 4  ;;  %s3800_s21 = scalar_lea.hbm %s4922_s4, 512  ;;  %s3795_s30 = int_to_ptr.hbm [resolvable:$true] %s3794_s30 }
  0x37   : > { %v353_v12 = vpack.c.bf16 %v281_v10, %v280_v9  ;;  %v296_v13 = vld [vmem:[%s3984_s6 + $0x1f0] sm:$0xff]  ;;  %1146 = vmatpush.bf16.msra.mxu0 %v337_v7  ;;  %v344_v21 = vpack.c.bf16 %v263_v19, %v262_v18  ;;  %v278_v22 = vld [vmem:[%s3984_s6 + $0x160] sm:$0xff]  ;;  %v279_v23 = vld [vmem:[%s3984_s6 + $0x168] sm:$0xff]  ;;  %s3796_s19 = scalar_lea.hbm %s3795_s30, 256  ;;  %p3801_p11 = scmp.lt.s32.totalorder %s3795_s30, %s4922_s4 }
  0x38   : > { %1235 = vmatpush.bf16.msra.mxu1 %v345_v8  ;;  %v361_v16 = vpack.c.bf16 %v297_v14, %v296_v13  ;;  %v505_v24 = vld [vmem:[%s4921_s3 + $0xf8] sm:$0xff]  ;;  %v352_v25 = vpack.c.bf16 %v279_v23, %v278_v22  ;;  %v294_v27 = vld [vmem:[%s3984_s6 + $0x1e0] sm:$0xff]  ;;  %v295_v28 = vld [vmem:[%s3984_s6 + $0x1e8] sm:$0xff]  ;;  %p3797_p1 = scmp.ne.s32.totalorder %s3795_s30, %s3796_s19  ;;  %p3802_p9 = scmp.lt.s32.totalorder %s3800_s21, %s3796_s19 }
  0x39   : > { %1324 = vmatpush.bf16.msra.mxu2 %v353_v12  ;;  %v489_v26 = vld [vmem:[%s4921_s3 + $0x78] sm:$0xff]  ;;  %v360_v29 = vpack.c.bf16 %v295_v28, %v294_v27  ;;  %v244_v30 = vld [vmem:[%s3984_s6 + $0x50] sm:$0xff]  ;;  %v487_v39 = vld [vmem:[%s4921_s3 + $0x68] sm:$0xff] }
  0x3a   : > { %1413 = vmatpush.bf16.msra.mxu3 %v361_v16  ;;  %v245_v31 = vld [vmem:[%s3984_s6 + $0x58] sm:$0xff]  ;;  %v260_v32 = vld [vmem:[%s3984_s6 + $0xd0] sm:$0xff]  ;;  %v242_v43 = vld [vmem:[%s3984_s6 + $0x40] sm:$0xff]  ;;  %p3798_p4 = pnand %p3797_p1, %p3954_p7  ;;  %p3803_p2 = por %p3802_p9, %p3801_p11 }
  0x3b   : > { %1147 = vmatpush.bf16.msra.mxu0 %v336_v20  ;;  %v335_v33 = vpack.c.bf16 %v245_v31, %v244_v30  ;;  %v261_v34 = vld [vmem:[%s3984_s6 + $0xd8] sm:$0xff]  ;;  %v276_v35 = vld [vmem:[%s3984_s6 + $0x150] sm:$0xff]  ;;  %v243_v44 = vld [vmem:[%s3984_s6 + $0x48] sm:$0xff] }
  0x3c   : > { %1236 = vmatpush.bf16.msra.mxu1 %v344_v21  ;;  %v277_v36 = vld [vmem:[%s3984_s6 + $0x158] sm:$0xff]  ;;  %663 = vperm.xlu1 %3462, %v505_v24   ;;  %v343_v37 = vpack.c.bf16 %v261_v34, %v260_v32  ;;  %v292_v40 = vld [vmem:[%s3984_s6 + $0x1d0] sm:$0xff]  ;;  %v258_v45 = vld [vmem:[%s3984_s6 + $0xc0] sm:$0xff]  ;;  %v334_v49 = vpack.c.bf16 %v243_v44, %v242_v43  ;;  %p3799_p8 = pneg %p3798_p4 }
  0x3d   : > { %1325 = vmatpush.bf16.msra.mxu2 %v352_v25  ;;  %v351_v38 = vpack.c.bf16 %v277_v36, %v276_v35  ;;  %v293_v41 = vld [vmem:[%s3984_s6 + $0x1d8] sm:$0xff]  ;;  %583 = vperm.xlu0 %3461, %v489_v26   ;;  %v259_v46 = vld [vmem:[%s3984_s6 + $0xc8] sm:$0xff]  ;;  %v274_v47 = vld [vmem:[%s3984_s6 + $0x140] sm:$0xff] }
  0x3e   : > { %1414 = vmatpush.bf16.msra.mxu3 %v360_v29  ;;  %v359_v42 = vpack.c.bf16 %v293_v41, %v292_v40  ;;  %573 = vperm.xlu2 %3463, %v487_v39   ;;  %v275_v48 = vld [vmem:[%s3984_s6 + $0x148] sm:$0xff]  ;;  %v342_v50 = vpack.c.bf16 %v259_v46, %v258_v45  ;;  %v290_v52 = vld [vmem:[%s3984_s6 + $0x1c0] sm:$0xff]  ;;  %v240_v55 = vld [vmem:[%s3984_s6 + $0x30] sm:$0xff]  ;;  %p3804_p10 = pnand %p3803_p2, %p3799_p8 }
  0x3f   : > { %1148 = vmatpush.bf16.msra.mxu0 %v335_v33  ;;  %v503_v51 = vld [vmem:[%s4921_s3 + $0xe8] sm:$0xff]  ;;  %v350_v53 = vpack.c.bf16 %v275_v48, %v274_v47  ;;  %v241_v56 = vld [vmem:[%s3984_s6 + $0x38] sm:$0xff]  ;;  %v256_v58 = vld [vmem:[%s3984_s6 + $0xb0] sm:$0xff] }
  0x40   : > { %1237 = vmatpush.bf16.msra.mxu1 %v343_v37  ;;  %v291_v54 = vld [vmem:[%s3984_s6 + $0x1c8] sm:$0xff]  ;;  %v257_v59 = vld [vmem:[%s3984_s6 + $0xb8] sm:$0xff]  ;;  %v272_v60 = vld [vmem:[%s3984_s6 + $0x130] sm:$0xff]  ;;  %v333_v0 = vpack.c.bf16 %v241_v56, %v240_v55 }
  0x41   : > { %1326 = vmatpush.bf16.msra.mxu2 %v351_v38  ;;  %v358_v57 = vpack.c.bf16 %v291_v54, %v290_v52  ;;  %v502_v61 = vld [vmem:[%s4921_s3 + $0xe0] sm:$0xff]  ;;  %v273_v62 = vld [vmem:[%s3984_s6 + $0x138] sm:$0xff]  ;;  %v288_v63 = vld [vmem:[%s3984_s6 + $0x1b0] sm:$0xff]  ;;  %v341_v1 = vpack.c.bf16 %v257_v59, %v256_v58 }
  0x42   : > { %1415 = vmatpush.bf16.msra.mxu3 %v359_v42  ;;  %v484_v2 = vld [vmem:[%s4921_s3 + $0x50] sm:$0xff]  ;;  %v289_v3 = vld [vmem:[%s3984_s6 + $0x1b8] sm:$0xff]  ;;  %v238_v4 = vld [vmem:[%s3984_s6 + $0x20] sm:$0xff]  ;;  %v349_v5 = vpack.c.bf16 %v273_v62, %v272_v60 }
  0x43   : > { %1149 = vmatpush.bf16.msra.mxu0 %v334_v49  ;;  %v239_v6 = vld [vmem:[%s3984_s6 + $0x28] sm:$0xff]  ;;  %v254_v7 = vld [vmem:[%s3984_s6 + $0xa0] sm:$0xff]  ;;  %v357_v9 = vpack.c.bf16 %v289_v3, %v288_v63  ;;  %v236_v16 = vld [vmem:[%s3984_s6 + $0x10] sm:$0xff] }
  0x44   : > { %1238 = vmatpush.bf16.msra.mxu1 %v342_v50  ;;  %653 = vperm.xlu1 %3462, %v503_v51   ;;  %v255_v8 = vld [vmem:[%s3984_s6 + $0xa8] sm:$0xff]  ;;  %v270_v10 = vld [vmem:[%s3984_s6 + $0x120] sm:$0xff]  ;;  %v332_v14 = vpack.c.bf16 %v239_v6, %v238_v4  ;;  %v237_v18 = vld [vmem:[%s3984_s6 + $0x18] sm:$0xff] }
  0x45   : > { %1327 = vmatpush.bf16.msra.mxu2 %v350_v53  ;;  %648 = vperm.xlu0 %3461, %v502_v61   ;;  %v271_v11 = vld [vmem:[%s3984_s6 + $0x128] sm:$0xff]  ;;  %v286_v12 = vld [vmem:[%s3984_s6 + $0x1a0] sm:$0xff]  ;;  %v340_v15 = vpack.c.bf16 %v255_v8, %v254_v7  ;;  %v252_v19 = vld [vmem:[%s3984_s6 + $0x90] sm:$0xff]  ;;  %v331_v28 = vpack.c.bf16 %v237_v18, %v236_v16 }
  0x46   : > { %1416 = vmatpush.bf16.msra.mxu3 %v358_v57  ;;  %558 = vperm.xlu2 %3463, %v484_v2   ;;  %v287_v13 = vld [vmem:[%s3984_s6 + $0x1a8] sm:$0xff]  ;;  %v348_v17 = vpack.c.bf16 %v271_v11, %v270_v10  ;;  %v253_v20 = vld [vmem:[%s3984_s6 + $0x98] sm:$0xff]  ;;  %v500_v21 = vld [vmem:[%s4921_s3 + $0xd0] sm:$0xff] }
  0x47   : > { %1150 = vmatpush.bf16.msra.mxu0 %v333_v0  ;;  %v356_v22 = vpack.c.bf16 %v287_v13, %v286_v12  ;;  %v268_v23 = vld [vmem:[%s3984_s6 + $0x110] sm:$0xff]  ;;  %v269_v24 = vld [vmem:[%s3984_s6 + $0x118] sm:$0xff]  ;;  %v339_v29 = vpack.c.bf16 %v253_v20, %v252_v19  ;;  %v234_v31 = vld [vmem:[%s3984_s6] sm:$0xff] }
  0x48   : > { %1239 = vmatpush.bf16.msra.mxu1 %v341_v1  ;;  %v485_v25 = vld [vmem:[%s4921_s3 + $0x58] sm:$0xff]  ;;  %v284_v26 = vld [vmem:[%s3984_s6 + $0x190] sm:$0xff]  ;;  %v347_v32 = vpack.c.bf16 %v269_v24, %v268_v23  ;;  %v235_v33 = vld [vmem:[%s3984_s6 + $0x8] sm:$0xff] }
  0x49   : > { %1328 = vmatpush.bf16.msra.mxu2 %v349_v5  ;;  %v285_v27 = vld [vmem:[%s3984_s6 + $0x198] sm:$0xff]  ;;  %v250_v34 = vld [vmem:[%s3984_s6 + $0x80] sm:$0xff]  ;;  %v251_v35 = vld [vmem:[%s3984_s6 + $0x88] sm:$0xff]  ;;  %v330_v42 = vpack.c.bf16 %v235_v33, %v234_v31 }
  0x4a   : > { %1417 = vmatpush.bf16.msra.mxu3 %v357_v9  ;;  %v501_v30 = vld [vmem:[%s4921_s3 + $0xd8] sm:$0xff]  ;;  %v355_v36 = vpack.c.bf16 %v285_v27, %v284_v26  ;;  %v266_v37 = vld [vmem:[%s3984_s6 + $0x100] sm:$0xff]  ;;  %v267_v38 = vld [vmem:[%s3984_s6 + $0x108] sm:$0xff]  ;;  %v338_v43 = vpack.c.bf16 %v251_v35, %v250_v34 }
  0x4b   : > { %1151 = vmatpush.bf16.msra.mxu0 %v332_v14  ;;  %v282_v39 = vld [vmem:[%s3984_s6 + $0x180] sm:$0xff]  ;;  %v283_v40 = vld [vmem:[%s3984_s6 + $0x188] sm:$0xff]  ;;  %v3268_v44 = vld [vmem:[#allocation5 + $0x14] sm:$0xf0]  ;;  %v346_v47 = vpack.c.bf16 %v267_v38, %v266_v37 }
  0x4c   : > { %1240 = vmatpush.bf16.msra.mxu1 %v340_v15  ;;  %638 = vperm.xlu1 %3462, %v500_v21   ;;  %v2719_v41 = vld [vmem:[#allocation5] sm:$0xf]  ;;  %v3265_v45 = vld [vmem:[#allocation5 + $0x4] sm:$0xf]  ;;  %v2721_v46 = vld [vmem:[#allocation5 + $0x18] sm:$0xf0]  ;;  %v354_v51 = vpack.c.bf16 %v283_v40, %v282_v39 }
  0x4d   : > { %1329 = vmatpush.bf16.msra.mxu2 %v348_v17  ;;  %563 = vperm.xlu0 %3461, %v485_v25   ;;  %v2727_v48 = vld [vmem:[#allocation5 + $0x8] sm:$0xf]  ;;  %v3269_v49 = vld [vmem:[#allocation5 + $0x1c] sm:$0xf0]  ;;  %v3266_v52 = vld [vmem:[#allocation5 + $0xc] sm:$0xf]  ;;  %v2720_v55 = vor.u32 %v3268_v44, %v2719_v41  ;;  %v2724_v56 = vor.u32 %v3265_v45, %v2721_v46 }
  0x4e   : > { %1418 = vmatpush.bf16.msra.mxu3 %v356_v22  ;;  %643 = vperm.xlu2 %3463, %v501_v30   ;;  %v483_v50 = vld [vmem:[%s4921_s3 + $0x48] sm:$0xff]  ;;  %v2729_v53 = vld [vmem:[#allocation5 + $0x20] sm:$0xf0]  ;;  %v2728_v57 = vor.u32 %v3269_v49, %v2727_v48  ;;  %v480_v60 = vld [vmem:[%s4921_s3 + $0x30] sm:$0xff] }
  0x4f   : > { %1152 = vmatpush.bf16.msra.mxu0 %v331_v28  ;;  %v482_v54 = vld [vmem:[%s4921_s3 + $0x40] sm:$0xff]  ;;  %v2732_v58 = vor.u32 %v3266_v52, %v2729_v53  ;;  %v499_v61 = vld [vmem:[%s4921_s3 + $0xc8] sm:$0xff]  ;;  %v481_v62 = vld [vmem:[%s4921_s3 + $0x38] sm:$0xff] }
  0x50   : > { %1241 = vmatpush.bf16.msra.mxu1 %v339_v29  ;;  %v498_v59 = vld [vmem:[%s4921_s3 + $0xc0] sm:$0xff]  ;;  %v2743_v63 = vld [vmem:[#allocation5 + $0x30] sm:$0xf]  ;;  %v3274_v0 = vld [vmem:[#allocation5 + $0x44] sm:$0xf0] }
  0x51   : > { %1330 = vmatpush.bf16.msra.mxu2 %v347_v32  ;;  %v3271_v1 = vld [vmem:[#allocation5 + $0x34] sm:$0xf]  ;;  %v2745_v2 = vld [vmem:[#allocation5 + $0x48] sm:$0xf0]  ;;  %v2751_v3 = vld [vmem:[#allocation5 + $0x38] sm:$0xf]  ;;  %v2744_v9 = vor.u32 %v3274_v0, %v2743_v63 }
  0x52   : > { %1419 = vmatpush.bf16.msra.mxu3 %v355_v36  ;;  %v3275_v4 = vld [vmem:[#allocation5 + $0x4c] sm:$0xf0]  ;;  %v497_v5 = vld [vmem:[%s4921_s3 + $0xb8] sm:$0xff]  ;;  %v2753_v7 = vld [vmem:[#allocation5 + $0x50] sm:$0xf0]  ;;  %v2748_v10 = vor.u32 %v3271_v1, %v2745_v2 }
  0x53   : > { %1153 = vmatpush.bf16.msra.mxu0 %v330_v42  ;;  %v3272_v6 = vld [vmem:[#allocation5 + $0x3c] sm:$0xf]  ;;  %v496_v8 = vld [vmem:[%s4921_s3 + $0xb0] sm:$0xff]  ;;  %v2752_v11 = vor.u32 %v3275_v4, %v2751_v3  ;;  %v478_v13 = vld [vmem:[%s4921_s3 + $0x20] sm:$0xff] }
  0x54   : > { %1242 = vmatpush.bf16.msra.mxu1 %v338_v43  ;;  %553 = vperm.xlu1 %3462, %v483_v50   ;;  %v2756_v12 = vor.u32 %v3272_v6, %v2753_v7  ;;  %v494_v14 = vld [vmem:[%s4921_s3 + $0xa0] sm:$0xff]  ;;  %v479_v15 = vld [vmem:[%s4921_s3 + $0x28] sm:$0xff]  ;;  %v3280_v18 = vld [vmem:[#allocation5 + $0x74] sm:$0xf0] }
  0x55   : > { %1331 = vmatpush.bf16.msra.mxu2 %v346_v47  ;;  %548 = vperm.xlu0 %3461, %v482_v54   ;;  %v495_v16 = vld [vmem:[%s4921_s3 + $0xa8] sm:$0xff]  ;;  %v2767_v17 = vld [vmem:[#allocation5 + $0x60] sm:$0xf]  ;;  %v3277_v19 = vld [vmem:[#allocation5 + $0x64] sm:$0xf] }
  0x56   : > { %1420 = vmatpush.bf16.msra.mxu3 %v354_v51  ;;  %1154 = vmatmul.bf16.vlgmr.msra.gmra.mxu0 %v2720_v55  ;;  %v2769_v20 = vld [vmem:[#allocation5 + $0x78] sm:$0xf0]  ;;  %v2775_v21 = vld [vmem:[#allocation5 + $0x68] sm:$0xf]  ;;  %v3281_v22 = vld [vmem:[#allocation5 + $0x7c] sm:$0xf0]  ;;  %v2768_v27 = vor.u32 %v3280_v18, %v2767_v17 }
  0x57   : > { %1243 = vmatmul.bf16.vlgmr.msra.gmra.mxu1 %v2724_v56  ;;  %628 = vperm.xlu2 %3463, %v498_v59   ;;  %v477_v23 = vld [vmem:[%s4921_s3 + $0x18] sm:$0xff]  ;;  %v3278_v24 = vld [vmem:[#allocation5 + $0x6c] sm:$0xf]  ;;  %v2777_v25 = vld [vmem:[#allocation5 + $0x80] sm:$0xf0]  ;;  %v2772_v28 = vor.u32 %v3277_v19, %v2769_v20  ;;  %v2776_v29 = vor.u32 %v3281_v22, %v2775_v21 }
  0x58   : > { %1332 = vmatmul.bf16.vlgmr.msra.gmra.mxu2 %v2728_v57  ;;  %v476_v26 = vld [vmem:[%s4921_s3 + $0x10] sm:$0xff]  ;;  %v2780_v30 = vor.u32 %v3278_v24, %v2777_v25  ;;  %v474_v32 = vld [vmem:[%s4921_s3] sm:$0xff]  ;;  %v475_v33 = vld [vmem:[%s4921_s3 + $0x8] sm:$0xff] }
  0x59   : > { %1421 = vmatmul.bf16.vlgmr.msra.gmra.mxu3 %v2732_v58  ;;  %v492_v31 = vld [vmem:[%s4921_s3 + $0x90] sm:$0xff]  ;;  %v3286_v35 = vld [vmem:[#allocation5 + $0xa4] sm:$0xf0]  ;;  %v2793_v37 = vld [vmem:[#allocation5 + $0xa8] sm:$0xf0] }
  0x5a   : > { %v2791_v34 = vld [vmem:[#allocation5 + $0x90] sm:$0xf]  ;;  %v3283_v36 = vld [vmem:[#allocation5 + $0x94] sm:$0xf]  ;;  %v2799_v38 = vld [vmem:[#allocation5 + $0x98] sm:$0xf] }
  0x5b   : > { %v3287_v39 = vld [vmem:[#allocation5 + $0xac] sm:$0xf0]  ;;  %v3284_v40 = vld [vmem:[#allocation5 + $0x9c] sm:$0xf]  ;;  %v2801_v41 = vld [vmem:[#allocation5 + $0xb0] sm:$0xf0]  ;;  %v2792_v42 = vor.u32 %v3286_v35, %v2791_v34  ;;  %v2796_v43 = vor.u32 %v3283_v36, %v2793_v37 }
  0x5c   : > { %538 = vperm.xlu1 %3462, %v480_v60   ;;  %v2800_v44 = vor.u32 %v3287_v39, %v2799_v38  ;;  %v2804_v45 = vor.u32 %v3284_v40, %v2801_v41  ;;  %v2815_v46 = vld [vmem:[#allocation5 + $0xc0] sm:$0xf]  ;;  %v3292_v47 = vld [vmem:[#allocation5 + $0xd4] sm:$0xf0]  ;;  %v3289_v48 = vld [vmem:[#allocation5 + $0xc4] sm:$0xf] }
  0x5d   : > { %633 = vperm.xlu0 %3461, %v499_v61   ;;  %v2817_v49 = vld [vmem:[#allocation5 + $0xd8] sm:$0xf0]  ;;  %v2823_v51 = vld [vmem:[#allocation5 + $0xc8] sm:$0xf]  ;;  %v3293_v52 = vld [vmem:[#allocation5 + $0xdc] sm:$0xf0]  ;;  %v2816_v55 = vor.u32 %v3292_v47, %v2815_v46 }
  0x5e   : > { %v3290_v53 = vld [vmem:[#allocation5 + $0xcc] sm:$0xf]  ;;  %v2825_v54 = vld [vmem:[#allocation5 + $0xe0] sm:$0xf0]  ;;  %v2820_v56 = vor.u32 %v3289_v48, %v2817_v49  ;;  %v2824_v57 = vor.u32 %v3293_v52, %v2823_v51  ;;  %v2839_v60 = vld [vmem:[#allocation5 + $0xf0] sm:$0xf] }
  0x5f   : > { %543 = vperm.xlu2 %3463, %v481_v62   ;;  %v2828_v58 = vor.u32 %v3290_v53, %v2825_v54  ;;  %v3298_v61 = vld [vmem:[#allocation5 + $0x104] sm:$0xf0]  ;;  %v3295_v62 = vld [vmem:[#allocation5 + $0xf4] sm:$0xf]  ;;  %v2841_v63 = vld [vmem:[#allocation5 + $0x108] sm:$0xf0] }
  0x60   : > { %v2847_v1 = vld [vmem:[#allocation5 + $0xf8] sm:$0xf]  ;;  %v3299_v2 = vld [vmem:[#allocation5 + $0x10c] sm:$0xf0]  ;;  %v3296_v3 = vld [vmem:[#allocation5 + $0xfc] sm:$0xf]  ;;  %v2844_v6 = vor.u32 %v3295_v62, %v2841_v63 }
  0x61   : > { %v2849_v4 = vld [vmem:[#allocation5 + $0x110] sm:$0xf0]  ;;  %v2848_v7 = vor.u32 %v3299_v2, %v2847_v1  ;;  %v2865_v17 = vld [vmem:[#allocation5 + $0x138] sm:$0xf0]  ;;  %v2871_v18 = vld [vmem:[#allocation5 + $0x128] sm:$0xf] }
  0x62   : > { %v3305_v19 = vld [vmem:[#allocation5 + $0x13c] sm:$0xf0]  ;;  %v3302_v21 = vld [vmem:[#allocation5 + $0x12c] sm:$0xf]  ;;  %v2873_v22 = vld [vmem:[#allocation5 + $0x140] sm:$0xf0] }
  0x63   : > { %v2872_v25 = vor.u32 %v3305_v19, %v2871_v18  ;;  %v3307_v35 = vld [vmem:[#allocation5 + $0x154] sm:$0xf]  ;;  %v2889_v36 = vld [vmem:[#allocation5 + $0x168] sm:$0xf0]  ;;  %v490_v37 = vld [vmem:[%s4921_s3 + $0x80] sm:$0xff] }
  0x64   : > { %623 = vperm.xlu1 %3462, %v497_v5   ;;  %v2840_v5 = vor.u32 %v3298_v61, %v2839_v60  ;;  %v2895_v38 = vld [vmem:[#allocation5 + $0x158] sm:$0xf]  ;;  %v3311_v39 = vld [vmem:[#allocation5 + $0x16c] sm:$0xf0]  ;;  %v3308_v41 = vld [vmem:[#allocation5 + $0x15c] sm:$0xf] }
  0x65   : > { %618 = vperm.xlu0 %3461, %v496_v8   ;;  %v2852_v8 = vor.u32 %v3296_v3, %v2849_v4  ;;  %v491_v49 = vld [vmem:[%s4921_s3 + $0x88] sm:$0xff]  ;;  %v2911_v53 = vld [vmem:[#allocation5 + $0x180] sm:$0xf]  ;;  %v2921_v63 = vld [vmem:[#allocation5 + $0x1a0] sm:$0xf0] }
  0x66   : > { %1159 = vmatmul.bf16.gmra.mxu0 %v2744_v9  ;;  %v3317_v60 = vld [vmem:[#allocation5 + $0x19c] sm:$0xf0]  ;;  %v3314_v62 = vld [vmem:[#allocation5 + $0x18c] sm:$0xf] }
  0x67   : > { %1248 = vmatmul.bf16.gmra.mxu1 %v2748_v10  ;;  %528 = vperm.xlu2 %3463, %v478_v13   ;;  %v2863_v13 = vld [vmem:[#allocation5 + $0x120] sm:$0xf] }
  0x68   : > { %1337 = vmatmul.bf16.gmra.mxu2 %v2752_v11 }
  0x69   : > { %1426 = vmatmul.bf16.gmra.mxu3 %v2756_v12 }
  0x6c   : > { %608 = vperm.xlu1 %3462, %v494_v14  }
  0x6d   : > { %533 = vperm.xlu0 %3461, %v479_v15   ;;  %v3304_v15 = vld [vmem:[#allocation5 + $0x134] sm:$0xf0] }
  0x6f   : > { %613 = vperm.xlu2 %3463, %v495_v16   ;;  %v3301_v16 = vld [vmem:[#allocation5 + $0x124] sm:$0xf] }
  0x70   : > { %v2868_v24 = vor.u32 %v3301_v16, %v2865_v17 }
  0x74   : > { %523 = vperm.xlu1 %3462, %v477_v23   ;;  %v2864_v23 = vor.u32 %v3304_v15, %v2863_v13 }
  0x75   : > { %518 = vperm.xlu0 %3461, %v476_v26   ;;  %v2876_v26 = vor.u32 %v3302_v21, %v2873_v22 }
  0x76   : > { %1164 = vmatmul.bf16.gmra.mxu0 %v2768_v27 }
  0x77   : > { %1253 = vmatmul.bf16.gmra.mxu1 %v2772_v28  ;;  %598 = vperm.xlu2 %3463, %v492_v31  }
  0x78   : > { %1342 = vmatmul.bf16.gmra.mxu2 %v2776_v29  ;;  %v493_v29 = vld [vmem:[%s4921_s3 + $0x98] sm:$0xff] }
  0x79   : > { %1431 = vmatmul.bf16.gmra.mxu3 %v2780_v30 }
  0x7c   : > { %508 = vperm.xlu1 %3462, %v474_v32   ;;  %v2887_v32 = vld [vmem:[#allocation5 + $0x150] sm:$0xf] }
  0x7d   : > { %603 = vperm.xlu0 %3461, %v493_v29   ;;  %v2937_v29 = vld [vmem:[#allocation5 + $0x1c8] sm:$0xf0] }
  0x7f   : > { %513 = vperm.xlu2 %3463, %v475_v33   ;;  %v3310_v33 = vld [vmem:[#allocation5 + $0x164] sm:$0xf0] }
  0x84   : > { %593 = vperm.xlu1 %3462, %v491_v49  }
  0x85   : > { %588 = vperm.xlu0 %3461, %v490_v37  }
  0x86   : > { %1169 = vmatmul.bf16.gmra.mxu0 %v2792_v42  ;;  %v2897_v42 = vld [vmem:[#allocation5 + $0x170] sm:$0xf0] }
  0x87   : > { %1258 = vmatmul.bf16.gmra.mxu1 %v2796_v43  ;;  %v2888_v43 = vor.u32 %v3310_v33, %v2887_v32  ;;  %v2900_v46 = vor.u32 %v3308_v41, %v2897_v42  ;;  %v2943_v32 = vld [vmem:[#allocation5 + $0x1b8] sm:$0xf]  ;;  %v3323_v33 = vld [vmem:[#allocation5 + $0x1cc] sm:$0xf0] }
  0x88   : > { %1347 = vmatmul.bf16.gmra.mxu2 %v2800_v44  ;;  %v2892_v44 = vor.u32 %v3307_v35, %v2889_v36  ;;  %v3320_v35 = vld [vmem:[#allocation5 + $0x1bc] sm:$0xf]  ;;  %v2945_v36 = vld [vmem:[#allocation5 + $0x1d0] sm:$0xf0] }
  0x89   : > { %1436 = vmatmul.bf16.gmra.mxu3 %v2804_v45  ;;  %v2896_v45 = vor.u32 %v3311_v39, %v2895_v38 }
  0x8f   : > { %v4145_v50 = vpop.permute.xlu2 %568 }
  0x96   : > { %1174 = vmatmul.bf16.gmra.mxu0 %v2816_v55  ;;  %v3316_v55 = vld [vmem:[#allocation5 + $0x194] sm:$0xf0] }
  0x97   : > { %1263 = vmatmul.bf16.gmra.mxu1 %v2820_v56  ;;  %v3313_v56 = vld [vmem:[#allocation5 + $0x184] sm:$0xf]  ;;  %v2912_v1 = vor.u32 %v3316_v55, %v2911_v53 }
  0x98   : > { %1352 = vmatmul.bf16.gmra.mxu2 %v2824_v57  ;;  %v4147_v59 = vpop.permute.xlu2 %573  ;;  %v2913_v57 = vld [vmem:[#allocation5 + $0x198] sm:$0xf0] }
  0x99   : > { %1441 = vmatmul.bf16.gmra.mxu3 %v2828_v58  ;;  %v2919_v58 = vld [vmem:[#allocation5 + $0x188] sm:$0xf]  ;;  %v2916_v2 = vor.u32 %v3313_v56, %v2913_v57 }
  0xa0   : > { %v4149_v0 = vpop.permute.xlu2 %558 }
  0xa6   : > { %1179 = vmatmul.bf16.gmra.mxu0 %v2840_v5  ;;  %v4151_v9 = vpop.permute.xlu1 %658  ;;  %v2920_v5 = vor.u32 %v3317_v60, %v2919_v58 }
  0xa7   : > { %1268 = vmatmul.bf16.gmra.mxu1 %v2844_v6  ;;  %v4153_v10 = vpop.permute.xlu0 %578  ;;  %v2924_v6 = vor.u32 %v3314_v62, %v2921_v63 }
  0xa8   : > { %1357 = vmatmul.bf16.gmra.mxu2 %v2848_v7  ;;  %v4155_v11 = vpop.permute.xlu2 %643 }
  0xa9   : > { %1446 = vmatmul.bf16.gmra.mxu3 %v2852_v8 }
  0xae   : > { %v4157_v12 = vpop.permute.xlu1 %663 }
  0xaf   : > { %v4159_v14 = vpop.permute.xlu0 %583 }
  0xb1   : > { %v4161_v20 = vpop.permute.xlu2 %628 }
  0xb6   : > { %1184 = vmatmul.bf16.gmra.mxu0 %v2864_v23  ;;  %v4163_v27 = vpop.permute.xlu1 %653  ;;  %v2935_v23 = vld [vmem:[#allocation5 + $0x1b0] sm:$0xf] }
  0xb7   : > { %1273 = vmatmul.bf16.gmra.mxu1 %v2868_v24  ;;  %v4165_v28 = vpop.permute.xlu0 %648 }
  0xb8   : > { %1362 = vmatmul.bf16.gmra.mxu2 %v2872_v25  ;;  %v3322_v25 = vld [vmem:[#allocation5 + $0x1c4] sm:$0xf0] }
  0xb9   : > { %1451 = vmatmul.bf16.gmra.mxu3 %v2876_v26  ;;  %v4170_v30 = vpop.permute.xlu2 %543  ;;  %v3319_v26 = vld [vmem:[#allocation5 + $0x1b4] sm:$0xf]  ;;  %v2936_v38 = vor.u32 %v3322_v25, %v2935_v23  ;;  %v2961_v23 = vld [vmem:[#allocation5 + $0x1f8] sm:$0xf0]  ;;  %v2967_v25 = vld [vmem:[#allocation5 + $0x1e8] sm:$0xf] }
  0xba   : > { %v2940_v39 = vor.u32 %v3319_v26, %v2937_v29  ;;  %v3329_v26 = vld [vmem:[#allocation5 + $0x1fc] sm:$0xf0] }
  0xbe   : > { %v4172_v31 = vpop.permute.xlu1 %638 }
  0xbf   : > { %v4174_v34 = vpop.permute.xlu0 %563 }
  0xc1   : > { %v4179_v40 = vpop.permute.xlu2 %528 }
  0xc6   : > { %1189 = vmatmul.bf16.gmra.mxu0 %v2888_v43  ;;  %v4181_v47 = vpop.permute.xlu1 %553 }
  0xc7   : > { %1278 = vmatmul.bf16.gmra.mxu1 %v2892_v44  ;;  %v4183_v48 = vpop.permute.xlu0 %548  ;;  %v2944_v44 = vor.u32 %v3323_v33, %v2943_v32  ;;  %v3326_v32 = vld [vmem:[#allocation5 + $0x1ec] sm:$0xf]  ;;  %v2969_v33 = vld [vmem:[#allocation5 + $0x200] sm:$0xf0] }
  0xc8   : > { %1367 = vmatmul.bf16.gmra.mxu2 %v2896_v45 }
  0xc9   : > { %1456 = vmatmul.bf16.gmra.mxu3 %v2900_v46  ;;  %v4188_v51 = vpop.permute.xlu2 %613  ;;  %v2948_v46 = vor.u32 %v3320_v35, %v2945_v36 }
  0xce   : > { %v4190_v52 = vpop.permute.xlu1 %538 }
  0xcf   : > { %v4192_v54 = vpop.permute.xlu0 %633 }
  0xd1   : > { %v4194_v61 = vpop.permute.xlu2 %598 }
  0xd3   : > { %v1155_v3 = vpop.f32.mrf.mxu0 }
  0xd4   : > { %v1244_v4 = vpop.f32.mrf.mxu1 }
  0xd6   : > { %1194 = vmatmul.bf16.gmra.mxu0 %v2912_v1  ;;  %v4196_v7 = vpop.permute.xlu1 %623 }
  0xd7   : > { %1283 = vmatmul.bf16.gmra.mxu1 %v2916_v2  ;;  %v4198_v8 = vpop.permute.xlu0 %618 }
  0xd8   : > { %1372 = vmatmul.bf16.gmra.mxu2 %v2920_v5 }
  0xd9   : > { %1461 = vmatmul.bf16.gmra.mxu3 %v2924_v6  ;;  %v514_v13 = vpop.permute.xlu2 %513 }
  0xdb   : > { %v1333_v15 = vpop.f32.mrf.mxu2  ;;  %v1157_v16 = vpop.f32.mrf.mxu0 }
  0xdc   : > { %v1246_v17 = vpop.f32.mrf.mxu1  ;;  %v1158_v18 = vadd.f32 %v1157_v16, %v514_v13  ;;  %v1422_v19 = vpop.f32.mrf.mxu3  ;;  %v2959_v16 = vld [vmem:[#allocation5 + $0x1e0] sm:$0xf] }
  0xde   : > { %v1247_v21 = vadd.f32 %v1246_v17, %v1158_v18  ;;  %v4200_v22 = vpop.permute.xlu1 %608  ;;  %v3328_v18 = vld [vmem:[#allocation5 + $0x1f4] sm:$0xf0] }
  0xdf   : > { %v4202_v24 = vpop.permute.xlu0 %533  ;;  %v2960_v36 = vor.u32 %v3328_v18, %v2959_v16  ;;  %v3332_v16 = vld [vmem:[#allocation5 + $0x21c] sm:$0xf] }
  0xe3   : > { %v1335_v37 = vpop.f32.mrf.mxu2  ;;  %v1160_v42 = vpop.f32.mrf.mxu0 }
  0xe4   : > { %v1336_v41 = vadd.f32 %v1335_v37, %v1247_v21  ;;  %v1249_v43 = vpop.f32.mrf.mxu1  ;;  %v1424_v45 = vpop.f32.mrf.mxu3  ;;  %v3325_v21 = vld [vmem:[#allocation5 + $0x1e4] sm:$0xf] }
  0xe5   : > { %v2964_v37 = vor.u32 %v3325_v21, %v2961_v23 }
  0xe6   : > { %v4204_v49 = vadd.f32 %v1424_v45, %v1336_v41  ;;  %1199 = vmatmul.bf16.gmra.mxu0 %v2936_v38  ;;  %v524_v53 = vpop.permute.xlu1 %523 }
  0xe7   : > { %1288 = vmatmul.bf16.gmra.mxu1 %v2940_v39  ;;  %v519_v55 = vpop.permute.xlu0 %518 }
  0xe8   : > { %1377 = vmatmul.bf16.gmra.mxu2 %v2944_v44  ;;  %v1161_v56 = vadd.f32 %v1160_v42, %v519_v55  ;;  %v2968_v42 = vor.u32 %v3329_v26, %v2967_v25 }
  0xe9   : > { %1466 = vmatmul.bf16.gmra.mxu3 %v2948_v46 }
  0xea   : > { %v1250_v57 = vadd.f32 %v1249_v43, %v1161_v56 }
  0xeb   : > { %v1338_v58 = vpop.f32.mrf.mxu2  ;;  %v1162_v60 = vpop.f32.mrf.mxu0 }
  0xec   : > { %v1251_v62 = vpop.f32.mrf.mxu1  ;;  %v1339_v63 = vadd.f32 %v1338_v58, %v1250_v57  ;;  %v1163_v1 = vadd.f32 %v1162_v60, %v524_v53  ;;  %v1427_v2 = vpop.f32.mrf.mxu3 }
  0xee   : > { %v1252_v5 = vadd.f32 %v1251_v62, %v1163_v1  ;;  %v4206_v6 = vadd.f32 %v1427_v2, %v1339_v63  ;;  %v509_v13 = vpop.permute.xlu1 %508  ;;  %v2983_v63 = vld [vmem:[#allocation5 + $0x210] sm:$0xf]  ;;  %v3334_v1 = vld [vmem:[#allocation5 + $0x224] sm:$0xf0]  ;;  %v3331_v2 = vld [vmem:[#allocation5 + $0x214] sm:$0xf] }
  0xef   : > { %v1156_v17 = vadd.f32 %v1155_v3, %v509_v13  ;;  %v2972_v3 = vor.u32 %v3326_v32, %v2969_v33  ;;  %v3335_v13 = vld [vmem:[#allocation5 + $0x22c] sm:$0xf0]  ;;  %v2984_v21 = vor.u32 %v3334_v1, %v2983_v63 }
  0xf1   : > { %v1245_v29 = vadd.f32 %v1244_v4, %v1156_v17  ;;  %v2993_v17 = vld [vmem:[#allocation5 + $0x230] sm:$0xf0] }
  0xf3   : > { %v1340_v35 = vpop.f32.mrf.mxu2  ;;  %v1165_v39 = vpop.f32.mrf.mxu0  ;;  %v1334_v43 = vadd.f32 %v1333_v15, %v1245_v29 }
  0xf4   : > { %v1341_v38 = vadd.f32 %v1340_v35, %v1252_v5  ;;  %v1254_v41 = vpop.f32.mrf.mxu1  ;;  %v1166_v44 = vadd.f32 %v1165_v39, %v4179_v40  ;;  %v1429_v45 = vpop.f32.mrf.mxu3  ;;  %v2991_v5 = vld [vmem:[#allocation5 + $0x218] sm:$0xf]  ;;  %v2996_v35 = vor.u32 %v3332_v16, %v2993_v17 }
  0xf5   : > { %v4211_v53 = vadd.f32 %v1422_v19, %v1334_v43  ;;  %v2985_v19 = vld [vmem:[#allocation5 + $0x228] sm:$0xf0]  ;;  %v2992_v32 = vor.u32 %v3335_v13, %v2991_v5 }
  0xf6   : > { %v4209_v46 = vadd.f32 %v1429_v45, %v1341_v38  ;;  %v1255_v55 = vadd.f32 %v1254_v41, %v1166_v44  ;;  %1204 = vmatmul.bf16.gmra.mxu0 %v2960_v36  ;;  %v2988_v23 = vor.u32 %v3331_v2, %v2985_v19 }
  0xf7   : > { %1293 = vmatmul.bf16.gmra.mxu1 %v2964_v37 }
  0xf8   : > { %1382 = vmatmul.bf16.gmra.mxu2 %v2968_v42 }
  0xf9   : > { %1471 = vmatmul.bf16.gmra.mxu3 %v2972_v3 }
  0xfb   : > { %v1343_v4 = vpop.f32.mrf.mxu2  ;;  %v1167_v57 = vpop.f32.mrf.mxu0 }
  0xfc   : > { %v1344_v56 = vadd.f32 %v1343_v4, %v1255_v55  ;;  %v1256_v58 = vpop.f32.mrf.mxu1  ;;  %v1168_v60 = vadd.f32 %v1167_v57, %v4202_v24  ;;  %v1432_v15 = vpop.f32.mrf.mxu3  ;;  %v3340_v55 = vld [vmem:[#allocation5 + $0x254] sm:$0xf0]  ;;  %v3337_v4 = vld [vmem:[#allocation5 + $0x244] sm:$0xf]  ;;  %v3015_v57 = vld [vmem:[#allocation5 + $0x248] sm:$0xf] }
  0xfe   : > { %v4214_v62 = vadd.f32 %v1432_v15, %v1344_v56  ;;  %v1257_v40 = vadd.f32 %v1256_v58, %v1168_v60  ;;  %v3009_v56 = vld [vmem:[#allocation5 + $0x258] sm:$0xf0]  ;;  %v3341_v58 = vld [vmem:[#allocation5 + $0x25c] sm:$0xf0]  ;;  %v3338_v60 = vld [vmem:[#allocation5 + $0x24c] sm:$0xf] }
  0xff   : > { %v3017_v15 = vld [vmem:[#allocation5 + $0x260] sm:$0xf0]  ;;  %v3012_v1 = vor.u32 %v3337_v4, %v3009_v56  ;;  %v3016_v5 = vor.u32 %v3341_v58, %v3015_v57  ;;  %v308_v4 = vld [vmem:[%s3984_s6 + $0x250] sm:$0xff]  ;;  %v309_v56 = vld [vmem:[%s3984_s6 + $0x258] sm:$0xff] }
 0x100   : > { %v3020_v17 = vor.u32 %v3338_v60, %v3017_v15  ;;  %v324_v57 = vld [vmem:[%s3984_s6 + $0x2d0] sm:$0xff]  ;;  %v3346_v15 = vld [vmem:[#allocation5 + $0x284] sm:$0xf0] }
 0x101   : > { %v3031_v60 = vld [vmem:[#allocation5 + $0x270] sm:$0xf] }
 0x103   : > { %v1345_v18 = vpop.f32.mrf.mxu2  ;;  %v1170_v26 = vpop.f32.mrf.mxu0 }
 0x104   : > { %v1346_v25 = vadd.f32 %v1345_v18, %v1257_v40  ;;  %v1259_v29 = vpop.f32.mrf.mxu1  ;;  %v1171_v24 = vadd.f32 %v1170_v26, %v4190_v52  ;;  %v1434_v33 = vpop.f32.mrf.mxu3  ;;  %v3007_v52 = vld [vmem:[#allocation5 + $0x240] sm:$0xf]  ;;  %v328_v26 = vld [vmem:[%s3984_s6 + $0x2f0] sm:$0xff] }
 0x105   : > { %v3008_v63 = vor.u32 %v3340_v55, %v3007_v52 }
 0x106   : > { %v4217_v36 = vadd.f32 %v1434_v33, %v1346_v25  ;;  %v1260_v37 = vadd.f32 %v1259_v29, %v1171_v24  ;;  %1209 = vmatmul.bf16.gmra.mxu0 %v2984_v21  ;;  %v313_v25 = vld [vmem:[%s3984_s6 + $0x278] sm:$0xff]  ;;  %v311_v33 = vld [vmem:[%s3984_s6 + $0x268] sm:$0xff] }
 0x107   : > { %1298 = vmatmul.bf16.gmra.mxu1 %v2988_v23  ;;  %v312_v23 = vld [vmem:[%s3984_s6 + $0x270] sm:$0xff] }
 0x108   : > { %1387 = vmatmul.bf16.gmra.mxu2 %v2992_v32  ;;  %v369_v29 = vpack.c.bf16 %v313_v25, %v312_v23  ;;  %v329_v32 = vld [vmem:[%s3984_s6 + $0x2f8] sm:$0xff]  ;;  %v3032_v25 = vor.u32 %v3346_v15, %v3031_v60 }
 0x109   : > { %1476 = vmatmul.bf16.gmra.mxu3 %v2996_v35  ;;  %v377_v24 = vpack.c.bf16 %v329_v32, %v328_v26  ;;  %v326_v35 = vld [vmem:[%s3984_s6 + $0x2e0] sm:$0xff]  ;;  %v323_v32 = vld [vmem:[%s3984_s6 + $0x2c8] sm:$0xff] }
 0x10a   : > { %1502 = vmatpush.bf16.msrb.mxu0 %v369_v29 }
 0x10b   : > { %v1348_v38 = vpop.f32.mrf.mxu2  ;;  %v1172_v41 = vpop.f32.mrf.mxu0  ;;  %1591 = vmatpush.bf16.msrb.mxu1 %v377_v24 }
 0x10c   : > { %v1349_v39 = vadd.f32 %v1348_v38, %v1260_v37  ;;  %v1261_v42 = vpop.f32.mrf.mxu1  ;;  %v1173_v43 = vadd.f32 %v1172_v41, %v4170_v30  ;;  %v1437_v44 = vpop.f32.mrf.mxu3 }
 0x10e   : > { %v4220_v45 = vadd.f32 %v1437_v44, %v1349_v39  ;;  %v1262_v3 = vadd.f32 %v1261_v42, %v1173_v43  ;;  %v327_v39 = vld [vmem:[%s3984_s6 + $0x2e8] sm:$0xff] }
 0x10f   : > { %v376_v44 = vpack.c.bf16 %v327_v39, %v326_v35 }
 0x111   : > { %1592 = vmatpush.bf16.msrb.mxu1 %v376_v44  ;;  %v320_v44 = vld [vmem:[%s3984_s6 + $0x2b0] sm:$0xff] }
 0x113   : > { %v1350_v40 = vpop.f32.mrf.mxu2  ;;  %v1175_v30 = vpop.f32.mrf.mxu0 }
 0x114   : > { %v1351_v2 = vadd.f32 %v1350_v40, %v1262_v3  ;;  %v1264_v19 = vpop.f32.mrf.mxu1  ;;  %v1176_v13 = vadd.f32 %v1175_v30, %v4183_v48  ;;  %v1439_v16 = vpop.f32.mrf.mxu3  ;;  %v310_v48 = vld [vmem:[%s3984_s6 + $0x260] sm:$0xff]  ;;  %v367_v40 = vpack.c.bf16 %v309_v56, %v308_v4  ;;  %v303_v56 = vld [vmem:[%s3984_s6 + $0x228] sm:$0xff] }
 0x115   : > { %v368_v38 = vpack.c.bf16 %v311_v33, %v310_v48  ;;  %v302_v4 = vld [vmem:[%s3984_s6 + $0x220] sm:$0xff] }
 0x116   : > { %v4223_v18 = vadd.f32 %v1439_v16, %v1351_v2  ;;  %v1265_v21 = vadd.f32 %v1264_v19, %v1176_v13  ;;  %1214 = vmatmul.bf16.gmra.mxu0 %v3008_v63  ;;  %v325_v63 = vld [vmem:[%s3984_s6 + $0x2d8] sm:$0xff]  ;;  %v3347_v19 = vld [vmem:[#allocation5 + $0x28c] sm:$0xf0]  ;;  %v3041_v13 = vld [vmem:[#allocation5 + $0x290] sm:$0xf0]  ;;  %v364_v15 = vpack.c.bf16 %v303_v56, %v302_v4 }
 0x117   : > { %1303 = vmatmul.bf16.gmra.mxu1 %v3012_v1  ;;  %1503 = vmatpush.bf16.msrb.mxu0 %v368_v38  ;;  %v3343_v1 = vld [vmem:[#allocation5 + $0x274] sm:$0xf]  ;;  %v3039_v2 = vld [vmem:[#allocation5 + $0x278] sm:$0xf]  ;;  %v375_v30 = vpack.c.bf16 %v325_v63, %v324_v57  ;;  %v306_v16 = vld [vmem:[%s3984_s6 + $0x240] sm:$0xff] }
 0x118   : > { %1392 = vmatmul.bf16.gmra.mxu2 %v3016_v5  ;;  %v3344_v5 = vld [vmem:[#allocation5 + $0x27c] sm:$0xf]  ;;  %v3040_v33 = vor.u32 %v3347_v19, %v3039_v2  ;;  %v318_v57 = vld [vmem:[%s3984_s6 + $0x2a0] sm:$0xff]  ;;  %v300_v19 = vld [vmem:[%s3984_s6 + $0x210] sm:$0xff] }
 0x119   : > { %1481 = vmatmul.bf16.gmra.mxu3 %v3020_v17  ;;  %v307_v17 = vld [vmem:[%s3984_s6 + $0x248] sm:$0xff]  ;;  %1593 = vmatpush.bf16.msrb.mxu1 %v375_v30  ;;  %v3044_v39 = vor.u32 %v3344_v5, %v3041_v13  ;;  %v301_v5 = vld [vmem:[%s3984_s6 + $0x218] sm:$0xff]  ;;  %v316_v13 = vld [vmem:[%s3984_s6 + $0x290] sm:$0xff] }
 0x11a   : > { %v366_v29 = vpack.c.bf16 %v307_v17, %v306_v16  ;;  %v3055_v17 = vld [vmem:[#allocation5 + $0x2a0] sm:$0xf] }
 0x11b   : > { %v1353_v37 = vpop.f32.mrf.mxu2  ;;  %v1177_v42 = vpop.f32.mrf.mxu0  ;;  %1504 = vmatpush.bf16.msrb.mxu0 %v367_v40  ;;  %v319_v40 = vld [vmem:[%s3984_s6 + $0x2a8] sm:$0xff] }
 0x11c   : > { %v1354_v41 = vadd.f32 %v1353_v37, %v1265_v21  ;;  %v1266_v43 = vpop.f32.mrf.mxu1  ;;  %v1178_v3 = vadd.f32 %v1177_v42, %v4181_v47  ;;  %v1442_v52 = vpop.f32.mrf.mxu3  ;;  %v3033_v47 = vld [vmem:[#allocation5 + $0x288] sm:$0xf0]  ;;  %v322_v21 = vld [vmem:[%s3984_s6 + $0x2c0] sm:$0xff]  ;;  %v304_v42 = vld [vmem:[%s3984_s6 + $0x230] sm:$0xff] }
 0x11d   : > { %v3036_v26 = vor.u32 %v3343_v1, %v3033_v47  ;;  %v374_v35 = vpack.c.bf16 %v323_v32, %v322_v21  ;;  %v372_v47 = vpack.c.bf16 %v319_v40, %v318_v57  ;;  %v3352_v21 = vld [vmem:[#allocation5 + $0x2b4] sm:$0xf0]  ;;  %v3057_v32 = vld [vmem:[#allocation5 + $0x2b8] sm:$0xf0] }
 0x11e   : > { %v4234_v55 = vadd.f32 %v1442_v52, %v1354_v41  ;;  %v4239_v58 = vadd.f32 %v1266_v43, %v1178_v3  ;;  %v305_v43 = vld [vmem:[%s3984_s6 + $0x238] sm:$0xff] }
 0x11f   : > { %1505 = vmatpush.bf16.msrb.mxu0 %v366_v29  ;;  %1594 = vmatpush.bf16.msrb.mxu1 %v374_v35  ;;  %v365_v3 = vpack.c.bf16 %v305_v43, %v304_v42  ;;  %v321_v52 = vld [vmem:[%s3984_s6 + $0x2b8] sm:$0xff]  ;;  %v3349_v29 = vld [vmem:[#allocation5 + $0x2a4] sm:$0xf] }
 0x120   : > { %v3065_v35 = vld [vmem:[#allocation5 + $0x2c0] sm:$0xf0] }
 0x121   : > { %v314_v42 = vld [vmem:[%s3984_s6 + $0x280] sm:$0xff] }
 0x123   : > { %v4245_v23 = vpop.f32.mrf.mxu2  ;;  %v1180_v24 = vpop.f32.mrf.mxu0  ;;  %1506 = vmatpush.bf16.msrb.mxu0 %v365_v3  ;;  %v3060_v3 = vor.u32 %v3349_v29, %v3057_v32  ;;  %v3081_v29 = vld [vmem:[#allocation5 + $0x2e8] sm:$0xf0]  ;;  %v3087_v32 = vld [vmem:[#allocation5 + $0x2d8] sm:$0xf] }
 0x124   : > { %v1269_v48 = vpop.f32.mrf.mxu1  ;;  %v1181_v37 = vadd.f32 %v1180_v24, %v4149_v0  ;;  %v4249_v38 = vpop.f32.mrf.mxu3  ;;  %v373_v0 = vpack.c.bf16 %v321_v52, %v320_v44  ;;  %v3063_v24 = vld [vmem:[#allocation5 + $0x2a8] sm:$0xf]  ;;  %v3056_v44 = vor.u32 %v3352_v21, %v3055_v17  ;;  %v3079_v21 = vld [vmem:[#allocation5 + $0x2d0] sm:$0xf] }
 0x126   : > { %v4251_v41 = vadd.f32 %v1269_v48, %v1181_v37  ;;  %1219 = vmatmul.bf16.gmra.mxu0 %v3032_v25  ;;  %1595 = vmatpush.bf16.msrb.mxu1 %v373_v0  ;;  %v363_v25 = vpack.c.bf16 %v301_v5, %v300_v19  ;;  %v3353_v48 = vld [vmem:[#allocation5 + $0x2bc] sm:$0xf0]  ;;  %v315_v0 = vld [vmem:[%s3984_s6 + $0x288] sm:$0xff] }
 0x127   : > { %1308 = vmatmul.bf16.gmra.mxu1 %v3036_v26  ;;  %1507 = vmatpush.bf16.msrb.mxu0 %v364_v15  ;;  %v317_v26 = vld [vmem:[%s3984_s6 + $0x298] sm:$0xff]  ;;  %v298_v37 = vld [vmem:[%s3984_s6 + $0x200] sm:$0xff]  ;;  %v3064_v57 = vor.u32 %v3353_v48, %v3063_v24  ;;  %v370_v15 = vpack.c.bf16 %v315_v0, %v314_v42  ;;  %v3359_v24 = vld [vmem:[#allocation5 + $0x2ec] sm:$0xf0] }
 0x128   : > { %1397 = vmatmul.bf16.gmra.mxu2 %v3040_v33  ;;  %v3350_v33 = vld [vmem:[#allocation5 + $0x2ac] sm:$0xf]  ;;  %v3089_v48 = vld [vmem:[#allocation5 + $0x2f0] sm:$0xf0] }
 0x129   : > { %1486 = vmatmul.bf16.gmra.mxu3 %v3044_v39  ;;  %v299_v39 = vld [vmem:[%s3984_s6 + $0x208] sm:$0xff] }
 0x12a   : > { %1596 = vmatpush.bf16.msrb.mxu1 %v372_v47  ;;  %v362_v52 = vpack.c.bf16 %v299_v39, %v298_v37 }
 0x12b   : > { %v4260_v60 = vpop.f32.mrf.mxu2  ;;  %v1182_v63 = vpop.f32.mrf.mxu0  ;;  %1508 = vmatpush.bf16.msrb.mxu0 %v363_v25  ;;  %v3358_v25 = vld [vmem:[#allocation5 + $0x2e4] sm:$0xf0] }
 0x12c   : > { %v1271_v1 = vpop.f32.mrf.mxu1  ;;  %v1183_v2 = vadd.f32 %v1182_v63, %v4174_v34  ;;  %v4264_v30 = vpop.f32.mrf.mxu3  ;;  %v371_v34 = vpack.c.bf16 %v317_v26, %v316_v13  ;;  %v3355_v26 = vld [vmem:[#allocation5 + $0x2d4] sm:$0xf] }
 0x12d   : > { %v3084_v37 = vor.u32 %v3355_v26, %v3081_v29 }
 0x12e   : > { %v4269_v16 = vadd.f32 %v1271_v1, %v1183_v2  ;;  %1597 = vmatpush.bf16.msrb.mxu1 %v371_v34  ;;  %v3068_v1 = vor.u32 %v3350_v33, %v3065_v35  ;;  %v3356_v34 = vld [vmem:[#allocation5 + $0x2dc] sm:$0xf]  ;;  %v3080_v35 = vor.u32 %v3358_v25, %v3079_v21  ;;  %v2737_v21 = vld [vmem:[#allocation5 + $0x28] sm:$0xf0] }
 0x12f   : > { %1509 = vmatpush.bf16.msrb.mxu0 %v362_v52  ;;  %v3092_v52 = vor.u32 %v3356_v34, %v3089_v48 }
 0x132   : > { %1598 = vmatpush.bf16.msrb.mxu1 %v370_v15 }
 0x133   : > { %v4275_v43 = vpop.f32.mrf.mxu2  ;;  %v1185_v4 = vpop.f32.mrf.mxu0 }
 0x134   : > { %v1274_v56 = vpop.f32.mrf.mxu1  ;;  %v1186_v40 = vadd.f32 %v1185_v4, %v4145_v50  ;;  %v4279_v63 = vpop.f32.mrf.mxu3 }
 0x135   : > { %v604_v4 = vpop.permute.xlu0 %603 }
 0x136   : > { %v4281_v47 = vadd.f32 %v1274_v56, %v1186_v40  ;;  %1224 = vmatmul.bf16.gmra.mxu0 %v3056_v44  ;;  %v3088_v44 = vor.u32 %v3359_v24, %v3087_v32 }
 0x137   : > { %1313 = vmatmul.bf16.gmra.mxu1 %v3060_v3 }
 0x138   : > { %1402 = vmatmul.bf16.gmra.mxu2 %v3064_v57 }
 0x139   : > { %1491 = vmatmul.bf16.gmra.mxu3 %v3068_v1 }
 0x13b   : > { %v4283_v2 = vpop.f32.mrf.mxu2  ;;  %v1187_v19 = vpop.f32.mrf.mxu0 }
 0x13c   : > { %v1276_v5 = vpop.f32.mrf.mxu1  ;;  %v1188_v13 = vadd.f32 %v1187_v19, %v4147_v59  ;;  %v4286_v17 = vpop.f32.mrf.mxu3 }
 0x13d   : > { %v589_v25 = vpop.permute.xlu0 %588 }
 0x13e   : > { %v4288_v50 = vadd.f32 %v1276_v5, %v1188_v13  ;;  %v3270_v5 = vld [vmem:[#allocation5 + $0x24] sm:$0xf0]  ;;  %v3267_v13 = vld [vmem:[#allocation5 + $0x14] sm:$0xf] }
 0x13f   : > { %v2740_v32 = vor.u32 %v3267_v13, %v2737_v21  ;;  %v3273_v13 = vld [vmem:[#allocation5 + $0x44] sm:$0xf]  ;;  %v2761_v21 = vld [vmem:[#allocation5 + $0x58] sm:$0xf0] }
 0x143   : > { %v4290_v33 = vpop.f32.mrf.mxu2  ;;  %v1190_v39 = vpop.f32.mrf.mxu0 }
 0x144   : > { %v1279_v42 = vpop.f32.mrf.mxu1  ;;  %v1191_v59 = vadd.f32 %v1190_v39, %v4153_v10  ;;  %v4293_v3 = vpop.f32.mrf.mxu3  ;;  %v2735_v10 = vld [vmem:[#allocation5 + $0x10] sm:$0xf] }
 0x145   : > { %v2736_v29 = vor.u32 %v3270_v5, %v2735_v10  ;;  %v2759_v10 = vld [vmem:[#allocation5 + $0x40] sm:$0xf]  ;;  %v3276_v5 = vld [vmem:[#allocation5 + $0x54] sm:$0xf0] }
 0x146   : > { %v4295_v0 = vadd.f32 %v1279_v42, %v1191_v59  ;;  %1229 = vmatmul.bf16.gmra.mxu0 %v3080_v35 }
 0x147   : > { %1318 = vmatmul.bf16.gmra.mxu1 %v3084_v37 }
 0x148   : > { %1407 = vmatmul.bf16.gmra.mxu2 %v3088_v44 }
 0x149   : > { %1496 = vmatmul.bf16.gmra.mxu3 %v3092_v52 }
 0x14b   : > { %v4297_v56 = vpop.f32.mrf.mxu2  ;;  %v1192_v57 = vpop.f32.mrf.mxu0 }
 0x14c   : > { %v1281_v15 = vpop.f32.mrf.mxu1  ;;  %v1193_v40 = vadd.f32 %v1192_v57, %v4159_v14  ;;  %v4300_v1 = vpop.f32.mrf.mxu3 }
 0x14d   : > { %v594_v14 = vpop.permute.xlu1 %593 }
 0x14e   : > { %v4302_v19 = vadd.f32 %v1281_v15, %v1193_v40 }
 0x153   : > { %v4304_v26 = vpop.f32.mrf.mxu2  ;;  %v1195_v24 = vpop.f32.mrf.mxu0 }
 0x154   : > { %v1284_v34 = vpop.f32.mrf.mxu1  ;;  %v1196_v48 = vadd.f32 %v1195_v24, %v589_v25  ;;  %v4306_v35 = vpop.f32.mrf.mxu3  ;;  %v2760_v24 = vor.u32 %v3276_v5, %v2759_v10  ;;  %v2783_v10 = vld [vmem:[#allocation5 + $0x70] sm:$0xf]  ;;  %v3282_v5 = vld [vmem:[#allocation5 + $0x84] sm:$0xf0] }
 0x156   : > { %v1285_v37 = vadd.f32 %v1284_v34, %v1196_v48  ;;  %1510 = vmatmul.bf16.vlgmr.msrb.gmra.mxu0 %v2736_v29  ;;  %v2764_v29 = vor.u32 %v3273_v13, %v2761_v21  ;;  %v3279_v13 = vld [vmem:[#allocation5 + $0x74] sm:$0xf]  ;;  %v2785_v21 = vld [vmem:[#allocation5 + $0x88] sm:$0xf0] }
 0x157   : > { %1599 = vmatmul.bf16.vlgmr.msrb.gmra.mxu1 %v2740_v32 }
 0x15b   : > { %v1373_v39 = vpop.f32.mrf.mxu2  ;;  %v1197_v44 = vpop.f32.mrf.mxu0 }
 0x15c   : > { %v1374_v42 = vadd.f32 %v1373_v39, %v1285_v37  ;;  %v1286_v59 = vpop.f32.mrf.mxu1  ;;  %v1198_v52 = vadd.f32 %v1197_v44, %v594_v14  ;;  %v1462_v57 = vpop.f32.mrf.mxu3 }
 0x15e   : > { %v4308_v15 = vadd.f32 %v1462_v57, %v1374_v42  ;;  %v4310_v40 = vadd.f32 %v1286_v59, %v1198_v52 }
 0x160   : > { %4928 = vst [vmem:[#allocation11_spill] sm:$0xff] %v4310_v40 }
 0x163   : > { %v4312_v25 = vpop.f32.mrf.mxu2  ;;  %v1200_v32 = vpop.f32.mrf.mxu0 }
 0x164   : > { %4929 = vst [vmem:[#allocation12_spill] sm:$0xff] %v4312_v25  ;;  %v1289_v34 = vpop.f32.mrf.mxu1  ;;  %v1201_v48 = vadd.f32 %v1200_v32, %v4194_v61  ;;  %v4315_v37 = vpop.f32.mrf.mxu3  ;;  %v2784_v32 = vor.u32 %v3282_v5, %v2783_v10  ;;  %v2807_v5 = vld [vmem:[#allocation5 + $0xa0] sm:$0xf] }
 0x166   : > { %v1290_v14 = vadd.f32 %v1289_v34, %v1201_v48  ;;  %1515 = vmatmul.bf16.gmra.mxu0 %v2760_v24  ;;  %v2788_v34 = vor.u32 %v3279_v13, %v2785_v21  ;;  %v3288_v13 = vld [vmem:[#allocation5 + $0xb4] sm:$0xf0]  ;;  %v3285_v21 = vld [vmem:[#allocation5 + $0xa4] sm:$0xf] }
 0x167   : > { %1604 = vmatmul.bf16.gmra.mxu1 %v2764_v29 }
 0x16b   : > { %v1378_v39 = vpop.f32.mrf.mxu2  ;;  %v1202_v44 = vpop.f32.mrf.mxu0 }
 0x16c   : > { %v1379_v42 = vadd.f32 %v1378_v39, %v1290_v14  ;;  %v1291_v59 = vpop.f32.mrf.mxu1  ;;  %v1203_v52 = vadd.f32 %v1202_v44, %v604_v4  ;;  %v1467_v57 = vpop.f32.mrf.mxu3 }
 0x16e   : > { %v4317_v40 = vadd.f32 %v1467_v57, %v1379_v42  ;;  %v4319_v25 = vadd.f32 %v1291_v59, %v1203_v52 }
 0x170   : > { %4930 = vst [vmem:[#allocation13_spill] sm:$0xff] %v4319_v25 }
 0x173   : > { %v4321_v61 = vpop.f32.mrf.mxu2  ;;  %v1205_v24 = vpop.f32.mrf.mxu0 }
 0x174   : > { %v1294_v29 = vpop.f32.mrf.mxu1  ;;  %v1206_v48 = vadd.f32 %v1205_v24, %v4200_v22  ;;  %v4324_v14 = vpop.f32.mrf.mxu3  ;;  %v2809_v22 = vld [vmem:[#allocation5 + $0xb8] sm:$0xf0] }
 0x176   : > { %v1295_v4 = vadd.f32 %v1294_v29, %v1206_v48  ;;  %1520 = vmatmul.bf16.gmra.mxu0 %v2784_v32  ;;  %v2808_v29 = vor.u32 %v3288_v13, %v2807_v5  ;;  %v2812_v32 = vor.u32 %v3285_v21, %v2809_v22  ;;  %v2831_v13 = vld [vmem:[#allocation5 + $0xd0] sm:$0xf]  ;;  %v3294_v21 = vld [vmem:[#allocation5 + $0xe4] sm:$0xf0]  ;;  %v3291_v22 = vld [vmem:[#allocation5 + $0xd4] sm:$0xf] }
 0x177   : > { %1609 = vmatmul.bf16.gmra.mxu1 %v2788_v34 }
 0x17b   : > { %v1383_v39 = vpop.f32.mrf.mxu2  ;;  %v1207_v44 = vpop.f32.mrf.mxu0 }
 0x17c   : > { %v1384_v42 = vadd.f32 %v1383_v39, %v1295_v4  ;;  %v1296_v59 = vpop.f32.mrf.mxu1  ;;  %v1208_v52 = vadd.f32 %v1207_v44, %v4188_v51  ;;  %v1472_v57 = vpop.f32.mrf.mxu3 }
 0x17e   : > { %v4327_v25 = vadd.f32 %v1472_v57, %v1384_v42  ;;  %v4329_v10 = vadd.f32 %v1296_v59, %v1208_v52 }
 0x180   : > { %4931 = vst [vmem:[#allocation14_spill] sm:$0xff] %v4327_v25 }
 0x181   : > { %4932 = vst [vmem:[#allocation15_spill] sm:$0xff] %v4329_v10 }
 0x183   : > { %v4331_v24 = vpop.f32.mrf.mxu2  ;;  %v1210_v34 = vpop.f32.mrf.mxu0 }
 0x184   : > { %v1299_v48 = vpop.f32.mrf.mxu1  ;;  %v1211_v4 = vadd.f32 %v1210_v34, %v4198_v8  ;;  %v4334_v39 = vpop.f32.mrf.mxu3  ;;  %v2833_v8 = vld [vmem:[#allocation5 + $0xe8] sm:$0xf0] }
 0x186   : > { %v1300_v51 = vadd.f32 %v1299_v48, %v1211_v4  ;;  %1525 = vmatmul.bf16.gmra.mxu0 %v2808_v29  ;;  %v2832_v48 = vor.u32 %v3294_v21, %v2831_v13  ;;  %v2836_v29 = vor.u32 %v3291_v22, %v2833_v8  ;;  %v2855_v21 = vld [vmem:[#allocation5 + $0x100] sm:$0xf]  ;;  %v3300_v22 = vld [vmem:[#allocation5 + $0x114] sm:$0xf0]  ;;  %v3297_v8 = vld [vmem:[#allocation5 + $0x104] sm:$0xf] }
 0x187   : > { %1614 = vmatmul.bf16.gmra.mxu1 %v2812_v32 }
 0x18b   : > { %v1388_v42 = vpop.f32.mrf.mxu2  ;;  %v1212_v59 = vpop.f32.mrf.mxu0 }
 0x18c   : > { %v1389_v44 = vadd.f32 %v1388_v42, %v1300_v51  ;;  %v1301_v52 = vpop.f32.mrf.mxu1  ;;  %v1213_v57 = vadd.f32 %v1212_v59, %v4196_v7  ;;  %v1477_v10 = vpop.f32.mrf.mxu3 }
 0x18e   : > { %v4337_v25 = vadd.f32 %v1477_v10, %v1389_v44  ;;  %v4339_v5 = vadd.f32 %v1301_v52, %v1213_v57 }
 0x190   : > { %4933 = vst [vmem:[#allocation16_spill] sm:$0xff] %v4337_v25 }
 0x191   : > { %4934 = vst [vmem:[#allocation17_spill] sm:$0xff] %v4339_v5 }
 0x193   : > { %v4341_v34 = vpop.f32.mrf.mxu2  ;;  %v1215_v32 = vpop.f32.mrf.mxu0 }
 0x194   : > { %v1304_v4 = vpop.f32.mrf.mxu1  ;;  %v1216_v51 = vadd.f32 %v1215_v32, %v4161_v20  ;;  %v4344_v42 = vpop.f32.mrf.mxu3  ;;  %v2857_v20 = vld [vmem:[#allocation5 + $0x118] sm:$0xf0]  ;;  %v2856_v32 = vor.u32 %v3300_v22, %v2855_v21  ;;  %v2881_v21 = vld [vmem:[#allocation5 + $0x148] sm:$0xf0] }
 0x195   : > { %4935 = vst [vmem:[#allocation18_spill] sm:$0xff] %v4344_v42  ;;  %v2860_v42 = vor.u32 %v3297_v8, %v2857_v20 }
 0x196   : > { %v1305_v7 = vadd.f32 %v1304_v4, %v1216_v51  ;;  %1530 = vmatmul.bf16.gmra.mxu0 %v2832_v48 }
 0x197   : > { %1619 = vmatmul.bf16.gmra.mxu1 %v2836_v29 }
 0x19b   : > { %v1393_v10 = vpop.f32.mrf.mxu2  ;;  %v1217_v59 = vpop.f32.mrf.mxu0 }
 0x19c   : > { %v1394_v44 = vadd.f32 %v1393_v10, %v1305_v7  ;;  %v1306_v52 = vpop.f32.mrf.mxu1  ;;  %v1218_v57 = vadd.f32 %v1217_v59, %v4192_v54  ;;  %v1482_v5 = vpop.f32.mrf.mxu3  ;;  %v3102_v10 = vld [vmem:[%s4921_s3 + $0x108] sm:$0xff]  ;;  %v2879_v59 = vld [vmem:[#allocation5 + $0x130] sm:$0xf] }
 0x19d   : > { %1928 = vperm.xlu0 %3461, %v3102_v10   ;;  %v2903_v10 = vld [vmem:[#allocation5 + $0x160] sm:$0xf] }
 0x19e   : > { %v4347_v25 = vadd.f32 %v1482_v5, %v1394_v44  ;;  %v4349_v13 = vadd.f32 %v1306_v52, %v1218_v57  ;;  %v3306_v52 = vld [vmem:[#allocation5 + $0x144] sm:$0xf0]  ;;  %v3303_v57 = vld [vmem:[#allocation5 + $0x134] sm:$0xf] }
 0x19f   : > { %v2884_v22 = vor.u32 %v3303_v57, %v2881_v21  ;;  %v2905_v57 = vld [vmem:[#allocation5 + $0x178] sm:$0xf0] }
 0x1a3   : > { %v1220_v4 = vpop.f32.mrf.mxu0 }
 0x1a4   : > { %v1309_v48 = vpop.f32.mrf.mxu1  ;;  %v1221_v29 = vadd.f32 %v1220_v4, %v4172_v31  ;;  %v2880_v31 = vor.u32 %v3306_v52, %v2879_v59  ;;  %v3312_v59 = vld [vmem:[#allocation5 + $0x174] sm:$0xf0]  ;;  %v3309_v52 = vld [vmem:[#allocation5 + $0x164] sm:$0xf] }
 0x1a5   : > { %v2904_v21 = vor.u32 %v3312_v59, %v2903_v10  ;;  %v2927_v10 = vld [vmem:[#allocation5 + $0x190] sm:$0xf]  ;;  %v3318_v59 = vld [vmem:[#allocation5 + $0x1a4] sm:$0xf0] }
 0x1a6   : > { %v4352_v51 = vadd.f32 %v1309_v48, %v1221_v29  ;;  %1535 = vmatmul.bf16.gmra.mxu0 %v2856_v32  ;;  %v3103_v32 = vld [vmem:[%s4921_s3 + $0x110] sm:$0xff] }
 0x1a7   : > { %1624 = vmatmul.bf16.gmra.mxu1 %v2860_v42  ;;  %1933 = vperm.xlu1 %3462, %v3103_v32  }
 0x1ab   : > { %v1222_v54 = vpop.f32.mrf.mxu0 }
 0x1ac   : > { %v1311_v7 = vpop.f32.mrf.mxu1  ;;  %v1223_v5 = vadd.f32 %v1222_v54, %v4155_v11  ;;  %v3105_v11 = vld [vmem:[%s4921_s3 + $0x120] sm:$0xff] }
 0x1ad   : > { %1943 = vperm.xlu0 %3461, %v3105_v11  }
 0x1ae   : > { %v4358_v44 = vadd.f32 %v1311_v7, %v1223_v5  ;;  %v3106_v7 = vld [vmem:[%s4921_s3 + $0x128] sm:$0xff] }
 0x1af   : > { %1948 = vperm.xlu1 %3462, %v3106_v7  }
 0x1b3   : > { %v1225_v8 = vpop.f32.mrf.mxu0 }
 0x1b4   : > { %v1314_v20 = vpop.f32.mrf.mxu1  ;;  %v1226_v42 = vadd.f32 %v1225_v8, %v4165_v28  ;;  %v3108_v28 = vld [vmem:[%s4921_s3 + $0x138] sm:$0xff] }
 0x1b5   : > { %1958 = vperm.xlu0 %3461, %v3108_v28   ;;  %v3112_v28 = vld [vmem:[%s4921_s3 + $0x158] sm:$0xff] }
 0x1b6   : > { %v4367_v4 = vadd.f32 %v1314_v20, %v1226_v42  ;;  %1540 = vmatmul.bf16.gmra.mxu0 %v2880_v31  ;;  %v2908_v31 = vor.u32 %v3309_v52, %v2905_v57  ;;  %v3111_v20 = vld [vmem:[%s4921_s3 + $0x150] sm:$0xff]  ;;  %v3109_v42 = vld [vmem:[%s4921_s3 + $0x140] sm:$0xff]  ;;  %v2929_v57 = vld [vmem:[#allocation5 + $0x1a8] sm:$0xf0] }
 0x1b7   : > { %1629 = vmatmul.bf16.gmra.mxu1 %v2884_v22  ;;  %1963 = vperm.xlu1 %3462, %v3109_v42   ;;  %v3315_v52 = vld [vmem:[#allocation5 + $0x194] sm:$0xf] }
 0x1b8   : > { %v3115_v42 = vld [vmem:[%s4921_s3 + $0x170] sm:$0xff] }
 0x1bb   : > { %v1227_v48 = vpop.f32.mrf.mxu0 }
 0x1bc   : > { %v1316_v29 = vpop.f32.mrf.mxu1  ;;  %v1228_v54 = vadd.f32 %v1227_v48, %v4163_v27 }
 0x1bd   : > { %1973 = vperm.xlu0 %3461, %v3111_v20   ;;  %v3117_v20 = vld [vmem:[%s4921_s3 + $0x180] sm:$0xff] }
 0x1be   : > { %v4376_v5 = vadd.f32 %v1316_v29, %v1228_v54  ;;  %v3114_v54 = vld [vmem:[%s4921_s3 + $0x168] sm:$0xff] }
 0x1bf   : > { %1978 = vperm.xlu1 %3462, %v3112_v28  }
 0x1c3   : > { %v1230_v22 = vpop.f32.mrf.mxu0 }
 0x1c4   : > { %v1319_v27 = vpop.f32.mrf.mxu1  ;;  %v1231_v8 = vadd.f32 %v1230_v22, %v4151_v9  ;;  %v3101_v9 = vld [vmem:[%s4921_s3 + $0x100] sm:$0xff] }
 0x1c5   : > { %1923 = vperm.xlu2 %3463, %v3101_v9   ;;  %1988 = vperm.xlu0 %3461, %v3114_v54  }
 0x1c6   : > { %v4385_v11 = vadd.f32 %v1319_v27, %v1231_v8  ;;  %1545 = vmatmul.bf16.gmra.mxu0 %v2904_v21  ;;  %v2928_v21 = vor.u32 %v3318_v59, %v2927_v10  ;;  %v3104_v27 = vld [vmem:[%s4921_s3 + $0x118] sm:$0xff]  ;;  %v3118_v59 = vld [vmem:[%s4921_s3 + $0x188] sm:$0xff] }
 0x1c7   : > { %1634 = vmatmul.bf16.gmra.mxu1 %v2908_v31  ;;  %v2932_v31 = vor.u32 %v3315_v52, %v2929_v57  ;;  %1993 = vperm.xlu1 %3462, %v3115_v42   ;;  %v3120_v10 = vld [vmem:[%s4921_s3 + $0x198] sm:$0xff]  ;;  %v2951_v57 = vld [vmem:[#allocation5 + $0x1c0] sm:$0xf] }
 0x1cb   : > { %v1232_v32 = vpop.f32.mrf.mxu0 }
 0x1cc   : > { %v1321_v48 = vpop.f32.mrf.mxu1  ;;  %v1233_v29 = vadd.f32 %v1232_v32, %v4157_v12 }
 0x1cd   : > { %1938 = vperm.xlu2 %3463, %v3104_v27   ;;  %2003 = vperm.xlu0 %3461, %v3117_v20  }
 0x1ce   : > { %v4397_v7 = vadd.f32 %v1321_v48, %v1233_v29 }
 0x1cf   : > { %2008 = vperm.xlu1 %3462, %v3118_v59  }
 0x1d3   : > { %v1511_v12 = vpop.f32.mrf.mxu0 }
 0x1d4   : > { %v1600_v22 = vpop.f32.mrf.mxu1  ;;  %v1512_v8 = vadd.f32 %v1511_v12, %v4211_v53  ;;  %v3107_v53 = vld [vmem:[%s4921_s3 + $0x130] sm:$0xff]  ;;  %v2953_v12 = vld [vmem:[#allocation5 + $0x1d8] sm:$0xf0] }
 0x1d5   : > { %1953 = vperm.xlu2 %3463, %v3107_v53   ;;  %2018 = vperm.xlu0 %3461, %v3120_v10  }
 0x1d6   : > { %v1601_v32 = vadd.f32 %v1600_v22, %v1512_v8  ;;  %1550 = vmatmul.bf16.gmra.mxu0 %v2928_v21  ;;  %v3324_v21 = vld [vmem:[#allocation5 + $0x1d4] sm:$0xf0] }
 0x1d7   : > { %1639 = vmatmul.bf16.gmra.mxu1 %v2932_v31  ;;  %v3321_v31 = vld [vmem:[#allocation5 + $0x1c4] sm:$0xf] }
 0x1d8   : > { %v1680_v48 = vsub.f32 0.0, %v1601_v32  ;;  %v2956_v8 = vor.u32 %v3321_v31, %v2953_v12  ;;  %v3110_v32 = vld [vmem:[%s4921_s3 + $0x148] sm:$0xff]  ;;  %v3113_v31 = vld [vmem:[%s4921_s3 + $0x160] sm:$0xff] }
 0x1da   : > { %v1712_v9 = vmul.f32 1.442695, %v1680_v48 }
 0x1db   : > { %v1513_v29 = vpop.f32.mrf.mxu0 }
 0x1dc   : > { %v1602_v54 = vpop.f32.mrf.mxu1  ;;  %v1514_v28 = vadd.f32 %v1513_v29, %v4204_v49  ;;  %3464 = vpow2.f32 %v1712_v9  ;;  %v2952_v49 = vor.u32 %v3324_v21, %v2951_v57  ;;  %v3123_v29 = vld [vmem:[%s4921_s3 + $0x1b0] sm:$0xff] }
 0x1dd   : > { %1968 = vperm.xlu2 %3463, %v3110_v32   ;;  %2033 = vperm.xlu0 %3461, %v3123_v29   ;;  %v2977_v32 = vld [vmem:[#allocation5 + $0x208] sm:$0xf0] }
 0x1de   : > { %v1603_v52 = vadd.f32 %v1602_v54, %v1514_v28  ;;  %v3121_v54 = vld [vmem:[%s4921_s3 + $0x1a0] sm:$0xff] }
 0x1df   : > { %2023 = vperm.xlu1 %3462, %v3121_v54  }
 0x1e0   : > { %v1681_v22 = vsub.f32 0.0, %v1603_v52 }
 0x1e2   : > { %v1714_v27 = vmul.f32 1.442695, %v1681_v22  ;;  %v3465_v9 = vpop.eup %3464  ;;  %v3126_v22 = vld [vmem:[%s4921_s3 + $0x1c8] sm:$0xff] }
 0x1e3   : > { %v1516_v20 = vpop.f32.mrf.mxu0  ;;  %v1776_v28 = vadd.f32 1.0, %v3465_v9 }
 0x1e4   : > { %v1605_v42 = vpop.f32.mrf.mxu1  ;;  %3466 = vpow2.f32 %v1714_v27  ;;  %v1517_v48 = vadd.f32 %v1516_v20, %v4206_v6  ;;  %v3124_v27 = vld [vmem:[%s4921_s3 + $0x1b8] sm:$0xff]  ;;  %v3330_v20 = vld [vmem:[#allocation5 + $0x204] sm:$0xf0] }
 0x1e5   : > { %3468 = vrcp.f32 %v1776_v28  ;;  %1983 = vperm.xlu2 %3463, %v3113_v31   ;;  %2048 = vperm.xlu0 %3461, %v3126_v22   ;;  %v3127_v31 = vld [vmem:[%s4921_s3 + $0x1d0] sm:$0xff] }
 0x1e6   : > { %v1606_v53 = vadd.f32 %v1605_v42, %v1517_v48  ;;  %1555 = vmatmul.bf16.gmra.mxu0 %v2952_v49  ;;  %v3327_v42 = vld [vmem:[#allocation5 + $0x1f4] sm:$0xf] }
 0x1e7   : > { %1644 = vmatmul.bf16.gmra.mxu1 %v2956_v8  ;;  %v2975_v8 = vld [vmem:[#allocation5 + $0x1f0] sm:$0xf]  ;;  %2038 = vperm.xlu1 %3462, %v3124_v27   ;;  %v2980_v54 = vor.u32 %v3327_v42, %v2977_v32 }
 0x1e8   : > { %v1682_v10 = vsub.f32 0.0, %v1606_v53  ;;  %v2976_v29 = vor.u32 %v3330_v20, %v2975_v8  ;;  %v3119_v32 = vld [vmem:[%s4921_s3 + $0x190] sm:$0xff] }
 0x1ea   : > { %v3467_v59 = vpop.eup %3466  ;;  %v1716_v6 = vmul.f32 1.442695, %v1682_v10 }
 0x1eb   : > { %v1777_v52 = vadd.f32 1.0, %v3467_v59  ;;  %v1518_v57 = vpop.f32.mrf.mxu0  ;;  %v3116_v59 = vld [vmem:[%s4921_s3 + $0x178] sm:$0xff] }
 0x1ec   : > { %v1607_v21 = vpop.f32.mrf.mxu1  ;;  %v1519_v12 = vadd.f32 %v1518_v57, %v4209_v46  ;;  %v4439_v46 = vpop.eup %3468 }
 0x1ed   : > { %3470 = vrcp.f32 %v1777_v52  ;;  %1998 = vperm.xlu2 %3463, %v3116_v59   ;;  %v3333_v59 = vld [vmem:[#allocation5 + $0x224] sm:$0xf] }
 0x1ee   : > { %v1608_v49 = vadd.f32 %v1607_v21, %v1519_v12  ;;  %3472 = vpow2.f32 %v1716_v6  ;;  %v3129_v21 = vld [vmem:[%s4921_s3 + $0x1e0] sm:$0xff] }
 0x1ef   : > { %2063 = vperm.xlu0 %3461, %v3129_v21   ;;  %2053 = vperm.xlu1 %3462, %v3127_v31  }
 0x1f0   : > { %v1683_v48 = vsub.f32 0.0, %v1608_v49 }
 0x1f2   : > { %v1718_v9 = vmul.f32 1.442695, %v1683_v48 }
 0x1f3   : > { %v4441_v53 = vpop.eup %3470  ;;  %v1521_v28 = vpop.f32.mrf.mxu0 }
 0x1f4   : > { %v1610_v10 = vpop.f32.mrf.mxu1  ;;  %3474 = vpow2.f32 %v1718_v9  ;;  %v1522_v52 = vadd.f32 %v1521_v28, %v4214_v62  ;;  %v1872_v6 = vpack.c.bf16 %v4441_v53, %v4439_v46  ;;  %v3473_v57 = vpop.eup %3472  ;;  %v3132_v9 = vld [vmem:[%s4921_s3 + $0x1f8] sm:$0xff]  ;;  %v2999_v28 = vld [vmem:[#allocation5 + $0x220] sm:$0xf] }
 0x1f5   : > { %v1778_v22 = vadd.f32 1.0, %v3473_v57  ;;  %2013 = vperm.xlu2 %3463, %v3119_v32  }
 0x1f6   : > { %v1611_v12 = vadd.f32 %v1610_v10, %v1522_v52  ;;  %1560 = vmatmul.bf16.gmra.mxu0 %v2976_v29  ;;  %v3130_v29 = vld [vmem:[%s4921_s3 + $0x1e8] sm:$0xff]  ;;  %v3336_v10 = vld [vmem:[#allocation5 + $0x234] sm:$0xf0]  ;;  %v3001_v52 = vld [vmem:[#allocation5 + $0x238] sm:$0xf0] }
 0x1f7   : > { %1649 = vmatmul.bf16.gmra.mxu1 %v2980_v54  ;;  %3476 = vrcp.f32 %v1778_v22  ;;  %2078 = vperm.xlu0 %3461, %v3132_v9   ;;  %v3000_v31 = vor.u32 %v3336_v10, %v2999_v28 }
 0x1f8   : > { %v1684_v62 = vsub.f32 0.0, %v1611_v12  ;;  %2068 = vperm.xlu1 %3462, %v3130_v29   ;;  %v3004_v12 = vor.u32 %v3333_v59, %v3001_v52  ;;  %v3125_v52 = vld [vmem:[%s4921_s3 + $0x1c0] sm:$0xff] }
 0x1fa   : > { %v3475_v27 = vpop.eup %3474  ;;  %v1720_v8 = vmul.f32 1.442695, %v1684_v62 }
 0x1fb   : > { %v1779_v49 = vadd.f32 1.0, %v3475_v27  ;;  %v1523_v20 = vpop.f32.mrf.mxu0 }
 0x1fc   : > { %v1612_v42 = vpop.f32.mrf.mxu1  ;;  %v1524_v48 = vadd.f32 %v1523_v20, %v4217_v36 }
 0x1fd   : > { %3478 = vrcp.f32 %v1779_v49  ;;  %v4465_v36 = vpop.eup %3476  ;;  %v3122_v49 = vld [vmem:[%s4921_s3 + $0x1a8] sm:$0xff] }
 0x1fe   : > { %v1613_v54 = vadd.f32 %v1612_v42, %v1524_v48  ;;  %3480 = vpow2.f32 %v1720_v8  ;;  %2028 = vperm.xlu2 %3463, %v3122_v49  }
 0x200   : > { %v1685_v57 = vsub.f32 0.0, %v1613_v54 }
 0x202   : > { %v1722_v21 = vmul.f32 1.442695, %v1685_v57 }
 0x203   : > { %v4467_v22 = vpop.eup %3478  ;;  %v1526_v62 = vpop.f32.mrf.mxu0 }
 0x204   : > { %v1615_v27 = vpop.f32.mrf.mxu1  ;;  %3482 = vpow2.f32 %v1722_v21  ;;  %v1527_v8 = vadd.f32 %v1526_v62, %v4220_v45  ;;  %v1873_v20 = vpack.c.bf16 %v4467_v22, %v4465_v36  ;;  %v3481_v42 = vpop.eup %3480  ;;  %v3023_v21 = vld [vmem:[#allocation5 + $0x250] sm:$0xf]  ;;  %v3025_v62 = vld [vmem:[#allocation5 + $0x268] sm:$0xf0] }
 0x205   : > { %v1780_v48 = vadd.f32 1.0, %v3481_v42 }
 0x206   : > { %v1616_v32 = vadd.f32 %v1615_v27, %v1527_v8  ;;  %1565 = vmatmul.bf16.gmra.mxu0 %v3000_v31  ;;  %2043 = vperm.xlu2 %3463, %v3125_v52   ;;  %v3342_v31 = vld [vmem:[#allocation5 + $0x264] sm:$0xf0] }
 0x207   : > { %1654 = vmatmul.bf16.gmra.mxu1 %v3004_v12  ;;  %3484 = vrcp.f32 %v1780_v48  ;;  %v3339_v12 = vld [vmem:[#allocation5 + $0x254] sm:$0xf]  ;;  %v3024_v42 = vor.u32 %v3342_v31, %v3023_v21 }
 0x208   : > { %v1686_v9 = vsub.f32 0.0, %v1616_v32  ;;  %v3028_v32 = vor.u32 %v3339_v12, %v3025_v62 }
 0x20a   : > { %v3483_v29 = vpop.eup %3482  ;;  %v1724_v28 = vmul.f32 1.442695, %v1686_v9 }
 0x20b   : > { %v1781_v54 = vadd.f32 1.0, %v3483_v29  ;;  %v1528_v10 = vpop.f32.mrf.mxu0 }
 0x20c   : > { %v1617_v59 = vpop.f32.mrf.mxu1  ;;  %v1529_v45 = vadd.f32 %v1528_v10, %v4223_v18  ;;  %v3128_v18 = vld [vmem:[%s4921_s3 + $0x1d8] sm:$0xff] }
 0x20d   : > { %3486 = vrcp.f32 %v1781_v54  ;;  %v4479_v49 = vpop.eup %3484 }
 0x20e   : > { %v1618_v57 = vadd.f32 %v1617_v59, %v1529_v45  ;;  %3488 = vpow2.f32 %v1724_v28  ;;  %2058 = vperm.xlu2 %3463, %v3128_v18   ;;  %v1356_v59 = vadd.f32 %v4245_v23, %v4239_v58  ;;  %v1359_v58 = vadd.f32 %v4260_v60, %v4251_v41 }
 0x210   : > { %v1687_v27 = vsub.f32 0.0, %v1618_v57  ;;  %v1445_v31 = vadd.f32 %v4249_v38, %v1356_v59  ;;  %v3345_v38 = vld [vmem:[#allocation5 + $0x284] sm:$0xf] }
 0x212   : > { %v1726_v8 = vmul.f32 1.442695, %v1687_v27 }
 0x213   : > { %v4481_v9 = vpop.eup %3486  ;;  %v1531_v29 = vpop.f32.mrf.mxu0 }
 0x214   : > { %v1620_v48 = vpop.f32.mrf.mxu1  ;;  %3490 = vpow2.f32 %v1726_v8  ;;  %v1532_v54 = vadd.f32 %v1531_v29, %v4234_v55  ;;  %v1874_v28 = vpack.c.bf16 %v4481_v9, %v4479_v49  ;;  %v3489_v10 = vpop.eup %3488  ;;  %v3131_v8 = vld [vmem:[%s4921_s3 + $0x1f0] sm:$0xff]  ;;  %v3362_v49 = vld [vmem:[%s4920_s2 + $0x4] sm:$0xf0] }
 0x215   : > { %v1782_v45 = vadd.f32 1.0, %v3489_v10  ;;  %v1448_v10 = vadd.f32 %v4264_v30, %v1359_v58 }
 0x216   : > { %v1621_v52 = vadd.f32 %v1620_v48, %v1532_v54  ;;  %1570 = vmatmul.bf16.gmra.mxu0 %v3024_v42  ;;  %2073 = vperm.xlu2 %3463, %v3131_v8   ;;  %v3047_v42 = vld [vmem:[#allocation5 + $0x280] sm:$0xf]  ;;  %v3049_v48 = vld [vmem:[#allocation5 + $0x298] sm:$0xf0] }
 0x217   : > { %1659 = vmatmul.bf16.gmra.mxu1 %v3028_v32  ;;  %3492 = vrcp.f32 %v1782_v45  ;;  %v3348_v32 = vld [vmem:[#allocation5 + $0x294] sm:$0xf0]  ;;  %v3052_v45 = vor.u32 %v3345_v38, %v3049_v48  ;;  %v1364_v48 = vadd.f32 %v4283_v2, %v4281_v47 }
 0x218   : > { %v1688_v57 = vsub.f32 0.0, %v1621_v52  ;;  %v3048_v52 = vor.u32 %v3348_v32, %v3047_v42 }
 0x21a   : > { %v3491_v21 = vpop.eup %3490  ;;  %v1728_v62 = vmul.f32 1.442695, %v1688_v57 }
 0x21b   : > { %v1783_v12 = vadd.f32 1.0, %v3491_v21  ;;  %v1533_v27 = vpop.f32.mrf.mxu0 }
 0x21c   : > { %v1622_v55 = vpop.f32.mrf.mxu1  ;;  %v1534_v29 = vadd.f32 %v1533_v27, %v1445_v31 }
 0x21d   : > { %3494 = vrcp.f32 %v1783_v12  ;;  %v4497_v54 = vpop.eup %3492 }
 0x21e   : > { %v1623_v23 = vadd.f32 %v1622_v55, %v1534_v29  ;;  %3496 = vpow2.f32 %v1728_v62  ;;  %v1361_v62 = vadd.f32 %v4275_v43, %v4269_v16  ;;  %v3071_v16 = vld [vmem:[#allocation5 + $0x2b0] sm:$0xf]  ;;  %v3354_v43 = vld [vmem:[#allocation5 + $0x2c4] sm:$0xf0] }
 0x220   : > { %v1689_v18 = vsub.f32 0.0, %v1623_v23  ;;  %v1450_v29 = vadd.f32 %v4279_v63, %v1361_v62  ;;  %v1453_v63 = vadd.f32 %v4286_v17, %v1364_v48 }
 0x222   : > { %v1730_v59 = vmul.f32 1.442695, %v1689_v18 }
 0x223   : > { %v4500_v57 = vpop.eup %3494  ;;  %v1536_v21 = vpop.f32.mrf.mxu0 }
 0x224   : > { %v1625_v31 = vpop.f32.mrf.mxu1  ;;  %3498 = vpow2.f32 %v1730_v59  ;;  %v1537_v41 = vadd.f32 %v1536_v21, %v1448_v10  ;;  %v1875_v60 = vpack.c.bf16 %v4500_v57, %v4497_v54  ;;  %v3497_v12 = vpop.eup %3496  ;;  %v3351_v10 = vld [vmem:[#allocation5 + $0x2b4] sm:$0xf]  ;;  %v3073_v59 = vld [vmem:[#allocation5 + $0x2c8] sm:$0xf0] }
 0x225   : > { %v1784_v30 = vadd.f32 1.0, %v3497_v12 }
 0x226   : > { %v1626_v27 = vadd.f32 %v1625_v31, %v1537_v41  ;;  %1575 = vmatmul.bf16.gmra.mxu0 %v3048_v52  ;;  %v3072_v31 = vor.u32 %v3354_v43, %v3071_v16  ;;  %v3076_v41 = vor.u32 %v3351_v10, %v3073_v59  ;;  %v1369_v16 = vadd.f32 %v4297_v56, %v4295_v0  ;;  %v3357_v10 = vld [vmem:[#allocation5 + $0x2e4] sm:$0xf]  ;;  %v3097_v59 = vld [vmem:[#allocation5 + $0x2f8] sm:$0xf0] }
 0x227   : > { %1664 = vmatmul.bf16.gmra.mxu1 %v3052_v45  ;;  %3500 = vrcp.f32 %v1784_v30 }
 0x228   : > { %v1690_v55 = vsub.f32 0.0, %v1626_v27 }
 0x22a   : > { %v3499_v8 = vpop.eup %3498  ;;  %v1732_v23 = vmul.f32 1.442695, %v1690_v55  ;;  %v1366_v55 = vadd.f32 %v4290_v33, %v4288_v50  ;;  %v3095_v50 = vld [vmem:[#allocation5 + $0x2e0] sm:$0xf]  ;;  %v3360_v33 = vld [vmem:[#allocation5 + $0x2f4] sm:$0xf0] }
 0x22b   : > { %v1785_v58 = vadd.f32 1.0, %v3499_v8  ;;  %v1538_v42 = vpop.f32.mrf.mxu0 }
 0x22c   : > { %v1627_v32 = vpop.f32.mrf.mxu1  ;;  %v1539_v38 = vadd.f32 %v1538_v42, %v1450_v29 }
 0x22d   : > { %3502 = vrcp.f32 %v1785_v58  ;;  %v4509_v45 = vpop.eup %3500 }
 0x22e   : > { %v1628_v18 = vadd.f32 %v1627_v32, %v1539_v38  ;;  %3504 = vpow2.f32 %v1732_v23  ;;  %v1455_v23 = vadd.f32 %v4293_v3, %v1366_v55  ;;  %v1458_v3 = vadd.f32 %v4300_v1, %v1369_v16 }
 0x22f   : > { %v1371_v55 = vadd.f32 %v4304_v26, %v4302_v19 }
 0x230   : > { %v1691_v52 = vsub.f32 0.0, %v1628_v18 }
 0x232   : > { %v1734_v21 = vmul.f32 1.442695, %v1691_v52 }
 0x233   : > { %v4512_v12 = vpop.eup %3502  ;;  %v1541_v62 = vpop.f32.mrf.mxu0 }
 0x234   : > { %v1630_v27 = vpop.f32.mrf.mxu1  ;;  %3506 = vpow2.f32 %v1734_v21  ;;  %v1542_v47 = vadd.f32 %v1541_v62, %v1453_v63  ;;  %v1876_v2 = vpack.c.bf16 %v4512_v12, %v4509_v45  ;;  %v3505_v30 = vpop.eup %3504 }
 0x235   : > { %v1786_v17 = vadd.f32 1.0, %v3505_v30 }
 0x236   : > { %v1631_v8 = vadd.f32 %v1630_v27, %v1542_v47  ;;  %1580 = vmatmul.bf16.gmra.mxu0 %v3072_v31  ;;  %v3096_v31 = vor.u32 %v3360_v33, %v3095_v50 }
 0x237   : > { %1669 = vmatmul.bf16.gmra.mxu1 %v3076_v41  ;;  %3508 = vrcp.f32 %v1786_v17  ;;  %v3100_v41 = vor.u32 %v3357_v10, %v3097_v59 }
 0x238   : > { %v1692_v29 = vsub.f32 0.0, %v1631_v8 }
 0x23a   : > { %v3507_v58 = vpop.eup %3506  ;;  %v1736_v32 = vmul.f32 1.442695, %v1692_v29 }
 0x23b   : > { %v1787_v42 = vadd.f32 1.0, %v3507_v58  ;;  %v1543_v38 = vpop.f32.mrf.mxu0  ;;  %v1460_v58 = vadd.f32 %v4306_v35, %v1371_v55 }
 0x23c   : > { %v1632_v48 = vpop.f32.mrf.mxu1  ;;  %v1544_v18 = vadd.f32 %v1543_v38, %v1455_v23 }
 0x23d   : > { %3510 = vrcp.f32 %v1787_v42  ;;  %v4521_v63 = vpop.eup %3508 }
 0x23e   : > { %v1633_v43 = vadd.f32 %v1632_v48, %v1544_v18  ;;  %3512 = vpow2.f32 %v1736_v32 }
 0x240   : > { %v1693_v52 = vsub.f32 0.0, %v1633_v43 }
 0x242   : > { %v1738_v21 = vmul.f32 1.442695, %v1693_v52  ;;  %v4936_v52 = vld [vmem:[#allocation11_spill] sm:$0xff] }
 0x243   : > { %v4524_v62 = vpop.eup %3510  ;;  %v1546_v27 = vpop.f32.mrf.mxu0 }
 0x244   : > { %v1635_v47 = vpop.f32.mrf.mxu1  ;;  %3514 = vpow2.f32 %v1738_v21  ;;  %v1547_v0 = vadd.f32 %v1546_v27, %v1458_v3  ;;  %v1877_v56 = vpack.c.bf16 %v4524_v62, %v4521_v63  ;;  %v3513_v30 = vpop.eup %3512  ;;  %v4937_v3 = vld [vmem:[#allocation12_spill] sm:$0xff] }
 0x245   : > { %v1788_v1 = vadd.f32 1.0, %v3513_v30  ;;  %v1376_v21 = vadd.f32 %v4937_v3, %v4936_v52 }
 0x246   : > { %v1636_v8 = vadd.f32 %v1635_v47, %v1547_v0  ;;  %1585 = vmatmul.bf16.gmra.mxu0 %v3096_v31 }
 0x247   : > { %1674 = vmatmul.bf16.gmra.mxu1 %v3100_v41  ;;  %3516 = vrcp.f32 %v1788_v1  ;;  %v1465_v0 = vadd.f32 %v4315_v37, %v1376_v21 }
 0x248   : > { %v1694_v17 = vsub.f32 0.0, %v1636_v8 }
 0x24a   : > { %v3515_v29 = vpop.eup %3514  ;;  %v1740_v42 = vmul.f32 1.442695, %v1694_v17 }
 0x24b   : > { %v1789_v23 = vadd.f32 1.0, %v3515_v29  ;;  %v1548_v32 = vpop.f32.mrf.mxu0 }
 0x24c   : > { %v1637_v38 = vpop.f32.mrf.mxu1  ;;  %v1549_v48 = vadd.f32 %v1548_v32, %v1460_v58 }
 0x24d   : > { %3518 = vrcp.f32 %v1789_v23  ;;  %v3517_v43 = vpop.eup %3516 }
 0x24e   : > { %v1638_v18 = vadd.f32 %v1637_v38, %v1549_v48  ;;  %3520 = vpow2.f32 %v1740_v42 }
 0x250   : > { %v1695_v16 = vsub.f32 0.0, %v1638_v18 }
 0x252   : > { %v1742_v19 = vmul.f32 1.442695, %v1695_v16  ;;  %v4938_v16 = vld [vmem:[#allocation13_spill] sm:$0xff] }
 0x253   : > { %v3519_v26 = vpop.eup %3518  ;;  %v1551_v50 = vpop.f32.mrf.mxu0 }
 0x254   : > { %v1640_v33 = vpop.f32.mrf.mxu1  ;;  %3522 = vpow2.f32 %v1742_v19  ;;  %v1552_v10 = vadd.f32 %v1551_v50, %v4308_v15  ;;  %v1878_v59 = vpack.c.bf16 %v3519_v26, %v3517_v43  ;;  %v3521_v35 = vpop.eup %3520  ;;  %v1381_v43 = vadd.f32 %v4321_v61, %v4938_v16 }
 0x255   : > { %v1790_v41 = vadd.f32 1.0, %v3521_v35 }
 0x256   : > { %v1641_v31 = vadd.f32 %v1640_v33, %v1552_v10  ;;  %v1470_v10 = vadd.f32 %v4324_v14, %v1381_v43 }
 0x257   : > { %3524 = vrcp.f32 %v1790_v41 }
 0x258   : > { %v1696_v27 = vsub.f32 0.0, %v1641_v31 }
 0x25a   : > { %v3523_v47 = vpop.eup %3522  ;;  %v1744_v55 = vmul.f32 1.442695, %v1696_v27 }
 0x25b   : > { %v1791_v30 = vadd.f32 1.0, %v3523_v47  ;;  %v1553_v8 = vpop.f32.mrf.mxu0 }
 0x25c   : > { %v1642_v1 = vpop.f32.mrf.mxu1  ;;  %v1554_v17 = vadd.f32 %v1553_v8, %v1465_v0  ;;  %v4939_v0 = vld [vmem:[#allocation14_spill] sm:$0xff] }
 0x25d   : > { %3526 = vrcp.f32 %v1791_v30  ;;  %v3525_v58 = vpop.eup %3524 }
 0x25e   : > { %v1643_v29 = vadd.f32 %v1642_v1, %v1554_v17  ;;  %3528 = vpow2.f32 %v1744_v55 }
 0x260   : > { %v1697_v15 = vsub.f32 0.0, %v1643_v29 }
 0x262   : > { %v1746_v23 = vmul.f32 1.442695, %v1697_v15 }
 0x263   : > { %v3527_v42 = vpop.eup %3526  ;;  %v1556_v32 = vpop.f32.mrf.mxu0 }
 0x264   : > { %v1645_v38 = vpop.f32.mrf.mxu1  ;;  %3530 = vpow2.f32 %v1746_v23  ;;  %v1557_v48 = vadd.f32 %v1556_v32, %v4317_v40  ;;  %v1879_v18 = vpack.c.bf16 %v3527_v42, %v3525_v58  ;;  %v3529_v37 = vpop.eup %3528 }
 0x265   : > { %v1792_v26 = vadd.f32 1.0, %v3529_v37  ;;  %v1395_v37 = vpop.f32.mrf.mxu2 }
 0x266   : > { %v1646_v19 = vadd.f32 %v1645_v38, %v1557_v48  ;;  %2241 = vmatpush.bf16.msrb.mxu2 %v1879_v18  ;;  %v4942_v48 = vld [vmem:[#allocation17_spill] sm:$0xff] }
 0x267   : > { %3532 = vrcp.f32 %v1792_v26  ;;  %v1391_v18 = vadd.f32 %v4341_v34, %v4942_v48  ;;  %v1484_v26 = vpop.f32.mrf.mxu3  ;;  %v3143_v34 = vld [vmem:[%s4920_s2 + $0x10] sm:$0xf] }
 0x268   : > { %v1698_v50 = vsub.f32 0.0, %v1646_v19 }
 0x26a   : > { %v3531_v33 = vpop.eup %3530  ;;  %2242 = vmatpush.bf16.msrb.mxu2 %v1878_v59  ;;  %v1748_v52 = vmul.f32 1.442695, %v1698_v50 }
 0x26b   : > { %v1793_v35 = vadd.f32 1.0, %v3531_v33  ;;  %v1558_v3 = vpop.f32.mrf.mxu0 }
 0x26c   : > { %v1647_v21 = vpop.f32.mrf.mxu1  ;;  %v1559_v31 = vadd.f32 %v1558_v3, %v1470_v10 }
 0x26d   : > { %3534 = vrcp.f32 %v1793_v35  ;;  %v4542_v41 = vpop.eup %3532 }
 0x26e   : > { %v1648_v40 = vadd.f32 %v1647_v21, %v1559_v31  ;;  %2243 = vmatpush.bf16.msrb.mxu2 %v1877_v56  ;;  %3536 = vpow2.f32 %v1748_v52  ;;  %v4940_v56 = vld [vmem:[#allocation15_spill] sm:$0xff]  ;;  %v3364_v21 = vld [vmem:[%s4920_s2 + $0x14] sm:$0xf0]  ;;  %v1398_v31 = vpop.f32.mrf.mxu2 }
 0x26f   : > { %v1386_v55 = vadd.f32 %v4331_v24, %v4940_v56 }
 0x270   : > { %v1699_v61 = vsub.f32 0.0, %v1648_v40 }
 0x271   : > { %v1475_v1 = vadd.f32 %v4334_v39, %v1386_v55  ;;  %v3135_v39 = vld [vmem:[%s4920_s2] sm:$0xf] }
 0x272   : > { %v1750_v27 = vmul.f32 1.442695, %v1699_v61  ;;  %2244 = vmatpush.bf16.msrb.mxu2 %v1876_v2  ;;  %v3144_v61 = vor.u32 %v3364_v21, %v3143_v34 }
 0x273   : > { %v4547_v14 = vpop.eup %3534  ;;  %v1561_v59 = vpop.f32.mrf.mxu0 }
 0x274   : > { %v1650_v47 = vpop.f32.mrf.mxu1  ;;  %3538 = vpow2.f32 %v1750_v27  ;;  %v1562_v30 = vadd.f32 %v1561_v59, %v4939_v0  ;;  %v1880_v63 = vpack.c.bf16 %v4547_v14, %v4542_v41  ;;  %v3537_v62 = vpop.eup %3536 }
 0x275   : > { %v1794_v45 = vadd.f32 1.0, %v3537_v62  ;;  %v1487_v62 = vpop.f32.mrf.mxu3 }
 0x276   : > { %v1651_v8 = vadd.f32 %v1650_v47, %v1562_v30  ;;  %2245 = vmatpush.bf16.msrb.mxu2 %v1875_v60  ;;  %v4941_v60 = vld [vmem:[#allocation16_spill] sm:$0xff] }
 0x277   : > { %3540 = vrcp.f32 %v1794_v45  ;;  %v1396_v45 = vadd.f32 %v1395_v37, %v4349_v13  ;;  %v3151_v13 = vld [vmem:[%s4920_s2 + $0x20] sm:$0xf] }
 0x278   : > { %v1700_v12 = vsub.f32 0.0, %v1651_v8 }
 0x27a   : > { %v3539_v2 = vpop.eup %3538  ;;  %2246 = vmatpush.bf16.msrb.mxu2 %v1874_v28  ;;  %v1752_v29 = vmul.f32 1.442695, %v1700_v12  ;;  %v3136_v28 = vor.u32 %v3362_v49, %v3135_v39 }
 0x27b   : > { %v1795_v17 = vadd.f32 1.0, %v3539_v2  ;;  %v1563_v15 = vpop.f32.mrf.mxu0 }
 0x27c   : > { %v1652_v58 = vpop.f32.mrf.mxu1  ;;  %v1564_v24 = vadd.f32 %v1563_v15, %v1475_v1  ;;  %v1400_v15 = vpop.f32.mrf.mxu2 }
 0x27d   : > { %3542 = vrcp.f32 %v1795_v17  ;;  %v4570_v54 = vpop.eup %3540 }
 0x27e   : > { %v1653_v23 = vadd.f32 %v1652_v58, %v1564_v24  ;;  %2247 = vmatpush.bf16.msrb.mxu2 %v1873_v20  ;;  %3544 = vpow2.f32 %v1752_v29  ;;  %v1485_v29 = vadd.f32 %v1484_v26, %v1396_v45 }
 0x280   : > { %v1701_v9 = vsub.f32 0.0, %v1653_v23 }
 0x282   : > { %v1754_v57 = vmul.f32 1.442695, %v1701_v9  ;;  %2248 = vmatpush.bf16.msrb.mxu2 %v1872_v6  ;;  %v4943_v6 = vld [vmem:[#allocation18_spill] sm:$0xff]  ;;  %v1489_v9 = vpop.f32.mrf.mxu3 }
 0x283   : > { %v4575_v36 = vpop.eup %3542  ;;  %v1566_v22 = vpop.f32.mrf.mxu0  ;;  %v1480_v19 = vadd.f32 %v4943_v6, %v1391_v18 }
 0x284   : > { %v1655_v20 = vpop.f32.mrf.mxu1  ;;  %3546 = vpow2.f32 %v1754_v57  ;;  %v1567_v42 = vadd.f32 %v1566_v22, %v4941_v60  ;;  %v1881_v32 = vpack.c.bf16 %v4575_v36, %v4570_v54  ;;  %v3545_v38 = vpop.eup %3544  ;;  %v3366_v57 = vld [vmem:[%s4920_s2 + $0x24] sm:$0xf0]  ;;  %v3207_v54 = vld [vmem:[%s4920_s2 + $0x90] sm:$0xf]  ;;  %v3380_v36 = vld [vmem:[%s4920_s2 + $0x94] sm:$0xf0] }
 0x285   : > { %2249 = vmatmul.bf16.vlgmr.msrb.gmra.mxu2 %v3136_v28  ;;  %v1796_v43 = vadd.f32 1.0, %v3545_v38  ;;  %v1403_v37 = vpop.f32.mrf.mxu2  ;;  %v3208_v41 = vor.u32 %v3380_v36, %v3207_v54 }
 0x286   : > { %v1656_v16 = vadd.f32 %v1655_v20, %v1567_v42  ;;  %v3152_v20 = vor.u32 %v3366_v57, %v3151_v13 }
 0x287   : > { %3548 = vrcp.f32 %v1796_v43 }
 0x288   : > { %v1702_v46 = vsub.f32 0.0, %v1656_v16 }
 0x28a   : > { %v3547_v53 = vpop.eup %3546  ;;  %v1756_v33 = vmul.f32 1.442695, %v1702_v46 }
 0x28b   : > { %v1797_v50 = vadd.f32 1.0, %v3547_v53  ;;  %v1568_v10 = vpop.f32.mrf.mxu0  ;;  %v1401_v53 = vadd.f32 %v1400_v15, %v4358_v44  ;;  %v3159_v44 = vld [vmem:[%s4920_s2 + $0x30] sm:$0xf] }
 0x28c   : > { %v1657_v35 = vpop.f32.mrf.mxu1  ;;  %v1569_v52 = vadd.f32 %v1568_v10, %v1480_v19  ;;  %v1492_v19 = vpop.f32.mrf.mxu3 }
 0x28d   : > { %3550 = vrcp.f32 %v1797_v50  ;;  %v4589_v27 = vpop.eup %3548  ;;  %v1490_v10 = vadd.f32 %v1489_v9, %v1401_v53 }
 0x28e   : > { %v1658_v3 = vadd.f32 %v1657_v35, %v1569_v52  ;;  %3552 = vpow2.f32 %v1756_v33 }
 0x290   : > { %v1703_v40 = vsub.f32 0.0, %v1658_v3 }
 0x292   : > { %v1758_v59 = vmul.f32 1.442695, %v1703_v40  ;;  %v1405_v40 = vpop.f32.mrf.mxu2 }
 0x293   : > { %v4591_v47 = vpop.eup %3550  ;;  %v1571_v0 = vpop.f32.mrf.mxu0  ;;  %v1406_v15 = vadd.f32 %v1405_v40, %v4376_v5  ;;  %v3167_v5 = vld [vmem:[%s4920_s2 + $0x40] sm:$0xf] }
 0x294   : > { %v1660_v30 = vpop.f32.mrf.mxu1  ;;  %3554 = vpow2.f32 %v1758_v59  ;;  %v1572_v56 = vadd.f32 %v1571_v0, %v4347_v25  ;;  %v1882_v55 = vpack.c.bf16 %v4591_v47, %v4589_v27  ;;  %v3553_v8 = vpop.eup %3552  ;;  %v1399_v25 = vadd.f32 %v1398_v31, %v4352_v51  ;;  %v3368_v59 = vld [vmem:[%s4920_s2 + $0x34] sm:$0xf0]  ;;  %v3137_v27 = vld [vmem:[%s4920_s2 + $0x8] sm:$0xf0] }
 0x295   : > { %2254 = vmatmul.bf16.gmra.mxu2 %v3144_v61  ;;  %v1798_v2 = vadd.f32 1.0, %v3553_v8  ;;  %v1404_v31 = vadd.f32 %v1403_v37, %v4367_v4  ;;  %v1494_v8 = vpop.f32.mrf.mxu3 }
 0x296   : > { %v1661_v12 = vadd.f32 %v1660_v30, %v1572_v56  ;;  %v1488_v42 = vadd.f32 %v1487_v62, %v1399_v25  ;;  %v3160_v30 = vor.u32 %v3368_v59, %v3159_v44  ;;  %v1495_v25 = vadd.f32 %v1494_v8, %v1406_v15  ;;  %v3175_v8 = vld [vmem:[%s4920_s2 + $0x50] sm:$0xf] }
 0x297   : > { %3556 = vrcp.f32 %v1798_v2  ;;  %v1493_v56 = vadd.f32 %v1492_v19, %v1404_v31 }
 0x298   : > { %v1704_v1 = vsub.f32 0.0, %v1661_v12 }
 0x29a   : > { %v3555_v17 = vpop.eup %3554  ;;  %v1760_v24 = vmul.f32 1.442695, %v1704_v1 }
 0x29b   : > { %v1799_v58 = vadd.f32 1.0, %v3555_v17  ;;  %v1573_v23 = vpop.f32.mrf.mxu0 }
 0x29c   : > { %v1662_v39 = vpop.f32.mrf.mxu1  ;;  %v1574_v49 = vadd.f32 %v1573_v23, %v1485_v29 }
 0x29d   : > { %3558 = vrcp.f32 %v1799_v58  ;;  %v4604_v60 = vpop.eup %3556 }
 0x29e   : > { %v1663_v28 = vadd.f32 %v1662_v39, %v1574_v49  ;;  %3560 = vpow2.f32 %v1760_v24  ;;  %v1408_v24 = vpop.f32.mrf.mxu2 }
 0x2a0   : > { %v1705_v22 = vsub.f32 0.0, %v1663_v28 }
 0x2a2   : > { %v1762_v38 = vmul.f32 1.442695, %v1705_v22 }
 0x2a3   : > { %v4606_v48 = vpop.eup %3558  ;;  %v1576_v51 = vpop.f32.mrf.mxu0 }
 0x2a4   : > { %v1665_v18 = vpop.f32.mrf.mxu1  ;;  %3562 = vpow2.f32 %v1762_v38  ;;  %v1577_v16 = vadd.f32 %v1576_v51, %v1488_v42  ;;  %v1883_v43 = vpack.c.bf16 %v4606_v48, %v4604_v60  ;;  %v3561_v46 = vpop.eup %3560  ;;  %v1409_v42 = vadd.f32 %v1408_v24, %v4385_v11  ;;  %v3370_v51 = vld [vmem:[%s4920_s2 + $0x44] sm:$0xf0]  ;;  %v3361_v60 = vld [vmem:[%s4920_s2 + $0x4] sm:$0xf]  ;;  %v3145_v48 = vld [vmem:[%s4920_s2 + $0x18] sm:$0xf0] }
 0x2a5   : > { %2259 = vmatmul.bf16.gmra.mxu2 %v3152_v20  ;;  %v1800_v26 = vadd.f32 1.0, %v3561_v46  ;;  %v1497_v20 = vpop.f32.mrf.mxu3  ;;  %v3168_v37 = vor.u32 %v3370_v51, %v3167_v5 }
 0x2a6   : > { %v1666_v6 = vadd.f32 %v1665_v18, %v1577_v16  ;;  %v1498_v46 = vadd.f32 %v1497_v20, %v1409_v42  ;;  %v1410_v53 = vpop.f32.mrf.mxu2  ;;  %v3376_v20 = vld [vmem:[%s4920_s2 + $0x74] sm:$0xf0] }
 0x2a7   : > { %3564 = vrcp.f32 %v1800_v26 }
 0x2a8   : > { %v1706_v50 = vsub.f32 0.0, %v1666_v6 }
 0x2aa   : > { %v3563_v33 = vpop.eup %3562  ;;  %v1764_v52 = vmul.f32 1.442695, %v1706_v50 }
 0x2ab   : > { %v1801_v35 = vadd.f32 1.0, %v3563_v33  ;;  %v1578_v3 = vpop.f32.mrf.mxu0 }
 0x2ac   : > { %v1667_v34 = vpop.f32.mrf.mxu1  ;;  %v1579_v21 = vadd.f32 %v1578_v3, %v1490_v10 }
 0x2ad   : > { %3566 = vrcp.f32 %v1801_v35  ;;  %v4618_v62 = vpop.eup %3564  ;;  %v1411_v35 = vadd.f32 %v1410_v53, %v4397_v7  ;;  %v1499_v3 = vpop.f32.mrf.mxu3  ;;  %v3372_v7 = vld [vmem:[%s4920_s2 + $0x54] sm:$0xf0] }
 0x2ae   : > { %v1668_v61 = vadd.f32 %v1667_v34, %v1579_v21  ;;  %3568 = vpow2.f32 %v1764_v52 }
 0x2af   : > { %v1500_v40 = vadd.f32 %v1499_v3, %v1411_v35 }
 0x2b0   : > { %v1707_v0 = vsub.f32 0.0, %v1668_v61 }
 0x2b2   : > { %v1766_v45 = vmul.f32 1.442695, %v1707_v0 }
 0x2b3   : > { %v4620_v12 = vpop.eup %3566  ;;  %v1581_v4 = vpop.f32.mrf.mxu0 }
 0x2b4   : > { %v1670_v2 = vpop.f32.mrf.mxu1  ;;  %3570 = vpow2.f32 %v1766_v45  ;;  %v1582_v1 = vadd.f32 %v1581_v4, %v1493_v56  ;;  %v1884_v17 = vpack.c.bf16 %v4620_v12, %v4618_v62  ;;  %v3569_v29 = vpop.eup %3568  ;;  %v3176_v4 = vor.u32 %v3372_v7, %v3175_v8  ;;  %v3378_v62 = vld [vmem:[%s4920_s2 + $0x84] sm:$0xf0]  ;;  %v3365_v12 = vld [vmem:[%s4920_s2 + $0x24] sm:$0xf]  ;;  %v3185_v7 = vld [vmem:[%s4920_s2 + $0x68] sm:$0xf0] }
 0x2b5   : > { %2264 = vmatmul.bf16.gmra.mxu2 %v3160_v30  ;;  %v1802_v23 = vadd.f32 1.0, %v3569_v29  ;;  %v3373_v8 = vld [vmem:[%s4920_s2 + $0x64] sm:$0xf] }
 0x2b6   : > { %v1671_v58 = vadd.f32 %v1670_v2, %v1582_v1 }
 0x2b7   : > { %3572 = vrcp.f32 %v1802_v23 }
 0x2b8   : > { %v1708_v39 = vsub.f32 0.0, %v1671_v58 }
 0x2ba   : > { %v3571_v49 = vpop.eup %3570  ;;  %v1768_v28 = vmul.f32 1.442695, %v1708_v39 }
 0x2bb   : > { %v1803_v9 = vadd.f32 1.0, %v3571_v49  ;;  %v1583_v13 = vpop.f32.mrf.mxu0  ;;  %v3183_v49 = vld [vmem:[%s4920_s2 + $0x60] sm:$0xf] }
 0x2bc   : > { %v1672_v57 = vpop.f32.mrf.mxu1  ;;  %v1584_v22 = vadd.f32 %v1583_v13, %v1495_v25  ;;  %v3374_v25 = vld [vmem:[%s4920_s2 + $0x64] sm:$0xf0] }
 0x2bd   : > { %3574 = vrcp.f32 %v1803_v9  ;;  %v3573_v16 = vpop.eup %3572  ;;  %v3184_v9 = vor.u32 %v3374_v25, %v3183_v49  ;;  %v3377_v25 = vld [vmem:[%s4920_s2 + $0x84] sm:$0xf] }
 0x2be   : > { %v1673_v38 = vadd.f32 %v1672_v57, %v1584_v22  ;;  %3576 = vpow2.f32 %v1768_v28  ;;  %v3191_v22 = vld [vmem:[%s4920_s2 + $0x70] sm:$0xf] }
 0x2bf   : > { %v3192_v42 = vor.u32 %v3376_v20, %v3191_v22 }
 0x2c0   : > { %v1709_v18 = vsub.f32 0.0, %v1673_v38  ;;  %v3199_v38 = vld [vmem:[%s4920_s2 + $0x80] sm:$0xf] }
 0x2c1   : > { %v3200_v47 = vor.u32 %v3378_v62, %v3199_v38  ;;  %v1929_v62 = vpop.permute.xlu0 %1928 }
 0x2c2   : > { %v1770_v6 = vmul.f32 1.442695, %v1709_v18  ;;  %v3223_v18 = vld [vmem:[%s4920_s2 + $0xb0] sm:$0xf] }
 0x2c3   : > { %v3575_v19 = vpop.eup %3574  ;;  %v1586_v26 = vpop.f32.mrf.mxu0 }
 0x2c4   : > { %v1675_v50 = vpop.f32.mrf.mxu1  ;;  %3578 = vpow2.f32 %v1770_v6  ;;  %v1587_v11 = vadd.f32 %v1586_v26, %v1498_v46  ;;  %v1885_v33 = vpack.c.bf16 %v3575_v19, %v3573_v16  ;;  %v3577_v10 = vpop.eup %3576  ;;  %v3367_v16 = vld [vmem:[%s4920_s2 + $0x34] sm:$0xf]  ;;  %v3161_v46 = vld [vmem:[%s4920_s2 + $0x38] sm:$0xf0] }
 0x2c5   : > { %2269 = vmatmul.bf16.gmra.mxu2 %v3168_v37  ;;  %v1804_v34 = vadd.f32 1.0, %v3577_v10  ;;  %v3384_v37 = vld [vmem:[%s4920_s2 + $0xb4] sm:$0xf0]  ;;  %v3164_v19 = vor.u32 %v3367_v16, %v3161_v46  ;;  %v3169_v10 = vld [vmem:[%s4920_s2 + $0x48] sm:$0xf0] }
 0x2c6   : > { %v1676_v52 = vadd.f32 %v1675_v50, %v1587_v11  ;;  %v3224_v6 = vor.u32 %v3384_v37, %v3223_v18  ;;  %v3231_v50 = vld [vmem:[%s4920_s2 + $0xc0] sm:$0xf]  ;;  %v3386_v11 = vld [vmem:[%s4920_s2 + $0xc4] sm:$0xf0] }
 0x2c7   : > { %3580 = vrcp.f32 %v1804_v34  ;;  %v3232_v35 = vor.u32 %v3386_v11, %v3231_v50 }
 0x2c8   : > { %v1710_v21 = vsub.f32 0.0, %v1676_v52 }
 0x2ca   : > { %v3579_v31 = vpop.eup %3578  ;;  %v1772_v44 = vmul.f32 1.442695, %v1710_v21  ;;  %v3239_v21 = vld [vmem:[%s4920_s2 + $0xd0] sm:$0xf] }
 0x2cb   : > { %v1805_v61 = vadd.f32 1.0, %v3579_v31  ;;  %v1588_v59 = vpop.f32.mrf.mxu0  ;;  %v3388_v31 = vld [vmem:[%s4920_s2 + $0xd4] sm:$0xf0] }
 0x2cc   : > { %v1589_v0 = vadd.f32 %v1588_v59, %v1500_v40  ;;  %v1677_v30 = vpop.f32.mrf.mxu1  ;;  %v3371_v40 = vld [vmem:[%s4920_s2 + $0x54] sm:$0xf] }
 0x2cd   : > { %3582 = vrcp.f32 %v1805_v61  ;;  %v3581_v2 = vpop.eup %3580  ;;  %v3177_v61 = vld [vmem:[%s4920_s2 + $0x58] sm:$0xf0] }
 0x2ce   : > { %v1678_v56 = vadd.f32 %v1677_v30, %v1589_v0  ;;  %3584 = vpow2.f32 %v1772_v44  ;;  %v3240_v44 = vor.u32 %v3388_v31, %v3239_v21  ;;  %v3180_v59 = vor.u32 %v3371_v40, %v3177_v61  ;;  %v3247_v30 = vld [vmem:[%s4920_s2 + $0xe0] sm:$0xf]  ;;  %v1944_v31 = vpop.permute.xlu0 %1943 }
 0x2d0   : > { %v1711_v45 = vsub.f32 0.0, %v1678_v56  ;;  %v3390_v56 = vld [vmem:[%s4920_s2 + $0xe4] sm:$0xf0] }
 0x2d2   : > { %v1774_v1 = vmul.f32 1.442695, %v1711_v45 }
 0x2d3   : > { %v3583_v29 = vpop.eup %3582 }
 0x2d4   : > { %3586 = vpow2.f32 %v1774_v1  ;;  %v1886_v15 = vpack.c.bf16 %v3583_v29, %v3581_v2  ;;  %v3585_v58 = vpop.eup %3584  ;;  %v3188_v2 = vor.u32 %v3373_v8, %v3185_v7  ;;  %v3255_v29 = vld [vmem:[%s4920_s2 + $0xf0] sm:$0xf] }
 0x2d5   : > { %2274 = vmatmul.bf16.gmra.mxu2 %v3176_v4  ;;  %v1806_v24 = vadd.f32 1.0, %v3585_v58  ;;  %v3248_v4 = vor.u32 %v3390_v56, %v3247_v30  ;;  %v3375_v58 = vld [vmem:[%s4920_s2 + $0x74] sm:$0xf] }
 0x2d7   : > { %3588 = vrcp.f32 %v1806_v24  ;;  %v3193_v24 = vld [vmem:[%s4920_s2 + $0x78] sm:$0xf0] }
 0x2da   : > { %v3587_v23 = vpop.eup %3586 }
 0x2db   : > { %v1807_v39 = vadd.f32 1.0, %v3587_v23 }
 0x2dd   : > { %3590 = vrcp.f32 %v1807_v39  ;;  %v3589_v28 = vpop.eup %3588  ;;  %v3196_v39 = vor.u32 %v3375_v58, %v3193_v24 }
 0x2e3   : > { %v3591_v13 = vpop.eup %3590 }
 0x2e4   : > { %v1887_v57 = vpack.c.bf16 %v3591_v13, %v3589_v28  ;;  %v1924_v13 = vpop.permute.xlu2 %1923 }
 0x2e5   : > { %2279 = vmatmul.bf16.gmra.mxu2 %v3184_v9  ;;  %v3201_v9 = vld [vmem:[%s4920_s2 + $0x88] sm:$0xf0] }
 0x2e6   : > { %2330 = vmatpush.bf16.msrb.mxu3 %v1887_v57  ;;  %v3204_v28 = vor.u32 %v3377_v25, %v3201_v9 }
 0x2ea   : > { %2331 = vmatpush.bf16.msrb.mxu3 %v1886_v15  ;;  %v3392_v15 = vld [vmem:[%s4920_s2 + $0xf4] sm:$0xf0] }
 0x2eb   : > { %v3256_v23 = vor.u32 %v3392_v15, %v3255_v29  ;;  %v3383_v29 = vld [vmem:[%s4920_s2 + $0xb4] sm:$0xf] }
 0x2ec   : > { %v1939_v46 = vpop.permute.xlu2 %1938 }
 0x2ee   : > { %2332 = vmatpush.bf16.msrb.mxu3 %v1885_v33  ;;  %v3369_v33 = vld [vmem:[%s4920_s2 + $0x44] sm:$0xf] }
 0x2ef   : > { %v3172_v52 = vor.u32 %v3369_v33, %v3169_v10 }
 0x2f2   : > { %2333 = vmatpush.bf16.msrb.mxu3 %v1884_v17  ;;  %v3153_v17 = vld [vmem:[%s4920_s2 + $0x28] sm:$0xf0] }
 0x2f3   : > { %v3156_v51 = vor.u32 %v3365_v12, %v3153_v17 }
 0x2f5   : > { %2284 = vmatmul.bf16.gmra.mxu2 %v3192_v42 }
 0x2f6   : > { %2334 = vmatpush.bf16.msrb.mxu3 %v1883_v43  ;;  %v3382_v43 = vld [vmem:[%s4920_s2 + $0xa4] sm:$0xf0] }
 0x2fa   : > { %2335 = vmatpush.bf16.msrb.mxu3 %v1882_v55  ;;  %v3140_v55 = vor.u32 %v3361_v60, %v3137_v27  ;;  %v3379_v60 = vld [vmem:[%s4920_s2 + $0x94] sm:$0xf]  ;;  %v3209_v27 = vld [vmem:[%s4920_s2 + $0x98] sm:$0xf0] }
 0x2fb   : > { %v3212_v36 = vor.u32 %v3379_v60, %v3209_v27 }
 0x2fe   : > { %2336 = vmatpush.bf16.msrb.mxu3 %v1881_v32  ;;  %v3363_v32 = vld [vmem:[%s4920_s2 + $0x14] sm:$0xf] }
 0x2ff   : > { %v3148_v14 = vor.u32 %v3363_v32, %v3145_v48 }
 0x302   : > { %2337 = vmatpush.bf16.msrb.mxu3 %v1880_v63  ;;  %v3215_v63 = vld [vmem:[%s4920_s2 + $0xa0] sm:$0xf] }
 0x303   : > { %v3216_v5 = vor.u32 %v3382_v43, %v3215_v63 }
 0x305   : > { %2289 = vmatmul.bf16.gmra.mxu2 %v3200_v47  ;;  %2338 = vmatmul.bf16.vlgmr.msrb.gmra.mxu3 %v3140_v55 }
 0x308   : > { %v2250_v53 = vpop.f32.mrf.mxu2 }
 0x309   : > { %v2251_v57 = vadd.f32 %v2250_v53, %v1924_v13 }
 0x310   : > { %v2252_v26 = vpop.f32.mrf.mxu2 }
 0x311   : > { %v2253_v47 = vadd.f32 %v2252_v26, %v1929_v62 }
 0x315   : > { %2294 = vmatmul.bf16.gmra.mxu2 %v3208_v41  ;;  %2343 = vmatmul.bf16.gmra.mxu3 %v3148_v14  ;;  %v1934_v14 = vpop.permute.xlu1 %1933 }
 0x318   : > { %v2255_v3 = vpop.f32.mrf.mxu2 }
 0x319   : > { %v2256_v12 = vadd.f32 %v2255_v3, %v1934_v14 }
 0x320   : > { %v4726_v34 = vpop.f32.mrf.mxu2 }
 0x321   : > { %v2258_v26 = vadd.f32 %v4726_v34, %v1939_v46 }
 0x325   : > { %2299 = vmatmul.bf16.gmra.mxu2 %v3216_v5  ;;  %2348 = vmatmul.bf16.gmra.mxu3 %v3156_v51 }
 0x328   : > { %v4740_v0 = vpop.f32.mrf.mxu2 }
 0x329   : > { %v2261_v34 = vadd.f32 %v4740_v0, %v1944_v31  ;;  %v3225_v0 = vld [vmem:[%s4920_s2 + $0xb8] sm:$0xf0] }
 0x330   : > { %v4754_v45 = vpop.f32.mrf.mxu2 }
 0x335   : > { %2304 = vmatmul.bf16.gmra.mxu2 %v3224_v6  ;;  %2353 = vmatmul.bf16.gmra.mxu3 %v3164_v19  ;;  %v3381_v6 = vld [vmem:[%s4920_s2 + $0xa4] sm:$0xf]  ;;  %v3217_v19 = vld [vmem:[%s4920_s2 + $0xa8] sm:$0xf0] }
 0x336   : > { %v3220_v10 = vor.u32 %v3381_v6, %v3217_v19 }
 0x338   : > { %v4756_v1 = vpop.f32.mrf.mxu2 }
 0x340   : > { %v4770_v49 = vpop.f32.mrf.mxu2 }
 0x345   : > { %2309 = vmatmul.bf16.gmra.mxu2 %v3232_v35  ;;  %2358 = vmatmul.bf16.gmra.mxu3 %v3172_v52 }
 0x348   : > { %v4784_v63 = vpop.f32.mrf.mxu2 }
 0x350   : > { %v4797_v50 = vpop.f32.mrf.mxu2 }
 0x355   : > { %2314 = vmatmul.bf16.gmra.mxu2 %v3240_v44  ;;  %2363 = vmatmul.bf16.gmra.mxu3 %v3180_v59 }
 0x358   : > { %v4801_v59 = vpop.f32.mrf.mxu2 }
 0x360   : > { %v4811_v25 = vpop.f32.mrf.mxu2 }
 0x365   : > { %2319 = vmatmul.bf16.gmra.mxu2 %v3248_v4  ;;  %2368 = vmatmul.bf16.gmra.mxu3 %v3188_v2  ;;  %v1949_v4 = vpop.permute.xlu1 %1948 }
 0x366   : > { %v2263_v15 = vadd.f32 %v4754_v45, %v1949_v4 }
 0x375   : > { %2324 = vmatmul.bf16.gmra.mxu2 %v3256_v23  ;;  %2373 = vmatmul.bf16.gmra.mxu3 %v3196_v39  ;;  %v3228_v23 = vor.u32 %v3383_v29, %v3225_v0 }
 0x385   : > { %2378 = vmatmul.bf16.gmra.mxu3 %v3204_v28 }
 0x388   : > { %v2339_v22 = vpop.f32.mrf.mxu3 }
 0x389   : > { %v2340_v20 = vadd.f32 %v2339_v22, %v2251_v57  ;;  %v1954_v57 = vpop.permute.xlu2 %1953 }
 0x38b   : > { %v2419_v42 = vsub.f32 0.0, %v2340_v20  ;;  %v2266_v20 = vadd.f32 %v4756_v1, %v1954_v57  ;;  %v3233_v1 = vld [vmem:[%s4920_s2 + $0xc8] sm:$0xf0] }
 0x38d   : > { %v2451_v38 = vmul.f32 1.442695, %v2419_v42 }
 0x38f   : > { %3592 = vpow2.f32 %v2451_v38 }
 0x390   : > { %v2341_v55 = vpop.f32.mrf.mxu3 }
 0x391   : > { %v2342_v54 = vadd.f32 %v2341_v55, %v2253_v47  ;;  %v1959_v47 = vpop.permute.xlu0 %1958  ;;  %v4815_v55 = vpop.f32.mrf.mxu2 }
 0x393   : > { %v2420_v32 = vsub.f32 0.0, %v2342_v54 }
 0x395   : > { %v3593_v48 = vpop.eup %3592  ;;  %v2453_v41 = vmul.f32 1.442695, %v2420_v32  ;;  %2383 = vmatmul.bf16.gmra.mxu3 %v3212_v36  ;;  %v3385_v36 = vld [vmem:[%s4920_s2 + $0xc4] sm:$0xf]  ;;  %v2268_v32 = vadd.f32 %v4770_v49, %v1959_v47 }
 0x396   : > { %v2515_v43 = vadd.f32 1.0, %v3593_v48  ;;  %v3236_v14 = vor.u32 %v3385_v36, %v3233_v1 }
 0x397   : > { %3594 = vpow2.f32 %v2453_v41 }
 0x398   : > { %3596 = vrcp.f32 %v2515_v43  ;;  %v2344_v17 = vpop.f32.mrf.mxu3 }
 0x399   : > { %v2345_v5 = vadd.f32 %v2344_v17, %v2256_v12 }
 0x39b   : > { %v2421_v51 = vsub.f32 0.0, %v2345_v5 }
 0x39d   : > { %v3595_v18 = vpop.eup %3594  ;;  %v2455_v37 = vmul.f32 1.442695, %v2421_v51  ;;  %v1964_v51 = vpop.permute.xlu1 %1963 }
 0x39e   : > { %v3597_v16 = vpop.eup %3596  ;;  %v2516_v53 = vadd.f32 1.0, %v3595_v18 }
 0x39f   : > { %2579 = vst [vmem:[%s4794_s23] sm:$0xff] %v3597_v16  ;;  %3598 = vpow2.f32 %v2455_v37  ;;  %v2271_v37 = vadd.f32 %v4784_v63, %v1964_v51  ;;  %v4827_v16 = vpop.f32.mrf.mxu2  ;;  %v3241_v63 = vld [vmem:[%s4920_s2 + $0xd8] sm:$0xf0] }
 0x3a0   : > { %3600 = vrcp.f32 %v2516_v53  ;;  %v2346_v11 = vpop.f32.mrf.mxu3 }
 0x3a1   : > { %v2347_v33 = vadd.f32 %v2346_v11, %v2258_v26  ;;  %v1969_v11 = vpop.permute.xlu2 %1968 }
 0x3a3   : > { %v2422_v35 = vsub.f32 0.0, %v2347_v33 }
 0x3a5   : > { %v3599_v52 = vpop.eup %3598  ;;  %v2457_v3 = vmul.f32 1.442695, %v2422_v35  ;;  %2388 = vmatmul.bf16.gmra.mxu3 %v3220_v10  ;;  %v3387_v10 = vld [vmem:[%s4920_s2 + $0xd4] sm:$0xf]  ;;  %v2273_v35 = vadd.f32 %v4797_v50, %v1969_v11 }
 0x3a6   : > { %v3601_v21 = vpop.eup %3600  ;;  %v2517_v40 = vadd.f32 1.0, %v3599_v52 }
 0x3a7   : > { %2580 = vst [vmem:[%s4794_s23 + $0x8] sm:$0xff] %v3601_v21  ;;  %3602 = vpow2.f32 %v2457_v3  ;;  %v3244_v21 = vor.u32 %v3387_v10, %v3241_v63  ;;  %v4837_v31 = vpop.f32.mrf.mxu2 }
 0x3a8   : > { %3604 = vrcp.f32 %v2517_v40  ;;  %v2349_v61 = vpop.f32.mrf.mxu3 }
 0x3a9   : > { %v2350_v44 = vadd.f32 %v2349_v61, %v2261_v34 }
 0x3ab   : > { %v2423_v30 = vsub.f32 0.0, %v2350_v44 }
 0x3ad   : > { %v3603_v56 = vpop.eup %3602  ;;  %v2459_v8 = vmul.f32 1.442695, %v2423_v30  ;;  %v1974_v30 = vpop.permute.xlu0 %1973 }
 0x3ae   : > { %v3605_v7 = vpop.eup %3604  ;;  %v2518_v2 = vadd.f32 1.0, %v3603_v56 }
 0x3af   : > { %2581 = vst [vmem:[%s4794_s23 + $0x10] sm:$0xff] %v3605_v7  ;;  %3606 = vpow2.f32 %v2459_v8  ;;  %v2276_v8 = vadd.f32 %v4801_v59, %v1974_v30  ;;  %v3249_v59 = vld [vmem:[%s4920_s2 + $0xe8] sm:$0xf0] }
 0x3b0   : > { %3608 = vrcp.f32 %v2518_v2  ;;  %v2351_v58 = vpop.f32.mrf.mxu3  ;;  %v4841_v2 = vpop.f32.mrf.mxu2 }
 0x3b1   : > { %v2352_v24 = vadd.f32 %v2351_v58, %v2263_v15  ;;  %v1979_v58 = vpop.permute.xlu1 %1978 }
 0x3b3   : > { %v2424_v39 = vsub.f32 0.0, %v2352_v24 }
 0x3b5   : > { %v3607_v9 = vpop.eup %3606  ;;  %v2461_v28 = vmul.f32 1.442695, %v2424_v39  ;;  %2393 = vmatmul.bf16.gmra.mxu3 %v3228_v23  ;;  %v3389_v23 = vld [vmem:[%s4920_s2 + $0xe4] sm:$0xf]  ;;  %v2278_v39 = vadd.f32 %v4811_v25, %v1979_v58 }
 0x3b6   : > { %v3609_v13 = vpop.eup %3608  ;;  %v2519_v22 = vadd.f32 1.0, %v3607_v9 }
 0x3b7   : > { %2582 = vst [vmem:[%s4794_s23 + $0x18] sm:$0xff] %v3609_v13  ;;  %3610 = vpow2.f32 %v2461_v28  ;;  %v3252_v13 = vor.u32 %v3389_v23, %v3249_v59 }
 0x3b8   : > { %3612 = vrcp.f32 %v2519_v22  ;;  %v2354_v45 = vpop.f32.mrf.mxu3 }
 0x3b9   : > { %v2355_v42 = vadd.f32 %v2354_v45, %v2266_v20 }
 0x3bb   : > { %v2425_v38 = vsub.f32 0.0, %v2355_v42  ;;  %v1984_v42 = vpop.permute.xlu2 %1983 }
 0x3bd   : > { %v3611_v62 = vpop.eup %3610  ;;  %v2463_v60 = vmul.f32 1.442695, %v2425_v38  ;;  %v2290_v38 = vpop.f32.mrf.mxu2 }
 0x3be   : > { %v3613_v27 = vpop.eup %3612  ;;  %v2520_v54 = vadd.f32 1.0, %v3611_v62 }
 0x3bf   : > { %2583 = vst [vmem:[%s4794_s23 + $0x20] sm:$0xff] %v3613_v27  ;;  %3614 = vpow2.f32 %v2463_v60  ;;  %v2281_v60 = vadd.f32 %v4815_v55, %v1984_v42 }
 0x3c0   : > { %3616 = vrcp.f32 %v2520_v54  ;;  %v2356_v48 = vpop.f32.mrf.mxu3 }
 0x3c1   : > { %v2357_v41 = vadd.f32 %v2356_v48, %v2268_v32  ;;  %v1989_v32 = vpop.permute.xlu0 %1988 }
 0x3c2   : > { %v2283_v55 = vadd.f32 %v4827_v16, %v1989_v32 }
 0x3c3   : > { %v2426_v43 = vsub.f32 0.0, %v2357_v41  ;;  %v3391_v41 = vld [vmem:[%s4920_s2 + $0xf4] sm:$0xf] }
 0x3c5   : > { %v3615_v12 = vpop.eup %3614  ;;  %v2465_v17 = vmul.f32 1.442695, %v2426_v43  ;;  %2398 = vmatmul.bf16.gmra.mxu3 %v3236_v14  ;;  %v3257_v14 = vld [vmem:[%s4920_s2 + $0xf8] sm:$0xf0]  ;;  %v2292_v43 = vpop.f32.mrf.mxu2 }
 0x3c6   : > { %v3617_v5 = vpop.eup %3616  ;;  %v2521_v18 = vadd.f32 1.0, %v3615_v12 }
 0x3c7   : > { %2584 = vst [vmem:[%s4794_s23 + $0x28] sm:$0xff] %v3617_v5  ;;  %3618 = vpow2.f32 %v2465_v17  ;;  %v3260_v5 = vor.u32 %v3391_v41, %v3257_v14 }
 0x3c8   : > { %3620 = vrcp.f32 %v2521_v18  ;;  %v2359_v49 = vpop.f32.mrf.mxu3 }
 0x3c9   : > { %v2360_v46 = vadd.f32 %v2359_v49, %v2271_v37 }
 0x3cb   : > { %v2427_v53 = vsub.f32 0.0, %v2360_v46  ;;  %v1994_v46 = vpop.permute.xlu1 %1993 }
 0x3cd   : > { %v3619_v6 = vpop.eup %3618  ;;  %v2467_v19 = vmul.f32 1.442695, %v2427_v53 }
 0x3ce   : > { %v3621_v26 = vpop.eup %3620  ;;  %v2522_v33 = vadd.f32 1.0, %v3619_v6  ;;  %v2286_v6 = vadd.f32 %v4837_v31, %v1994_v46 }
 0x3cf   : > { %2585 = vst [vmem:[%s4794_s23 + $0x30] sm:$0xff] %v3621_v26  ;;  %3622 = vpow2.f32 %v2467_v19  ;;  %v2295_v26 = vpop.f32.mrf.mxu2 }
 0x3d0   : > { %3624 = vrcp.f32 %v2522_v33  ;;  %v2361_v52 = vpop.f32.mrf.mxu3 }
 0x3d1   : > { %v2362_v3 = vadd.f32 %v2361_v52, %v2273_v35  ;;  %v1999_v35 = vpop.permute.xlu2 %1998 }
 0x3d3   : > { %v2428_v40 = vsub.f32 0.0, %v2362_v3  ;;  %v2288_v3 = vadd.f32 %v4841_v2, %v1999_v35  ;;  %v2009_v58 = vpop.permute.xlu1 %2008 }
 0x3d4   : > { %v2293_v59 = vadd.f32 %v2292_v43, %v2009_v58 }
 0x3d5   : > { %v3623_v34 = vpop.eup %3622  ;;  %v2469_v61 = vmul.f32 1.442695, %v2428_v40  ;;  %2403 = vmatmul.bf16.gmra.mxu3 %v3244_v21 }
 0x3d6   : > { %v3625_v44 = vpop.eup %3624  ;;  %v2523_v56 = vadd.f32 1.0, %v3623_v34 }
 0x3d7   : > { %2586 = vst [vmem:[%s4794_s23 + $0x38] sm:$0xff] %v3625_v44  ;;  %3626 = vpow2.f32 %v2469_v61  ;;  %v2297_v34 = vpop.f32.mrf.mxu2 }
 0x3d8   : > { %3628 = vrcp.f32 %v2523_v56  ;;  %v2364_v50 = vpop.f32.mrf.mxu3  ;;  %v2004_v56 = vpop.permute.xlu0 %2003 }
 0x3d9   : > { %v2365_v7 = vadd.f32 %v2364_v50, %v2276_v8  ;;  %v2291_v50 = vadd.f32 %v2290_v38, %v2004_v56 }
 0x3db   : > { %v2429_v4 = vsub.f32 0.0, %v2365_v7 }
 0x3dd   : > { %v3627_v29 = vpop.eup %3626  ;;  %v2471_v0 = vmul.f32 1.442695, %v2429_v4 }
 0x3de   : > { %v3629_v15 = vpop.eup %3628  ;;  %v2524_v24 = vadd.f32 1.0, %v3627_v29 }
 0x3df   : > { %2587 = vst [vmem:[%s4794_s23 + $0x40] sm:$0xff] %v3629_v15  ;;  %3630 = vpow2.f32 %v2471_v0 }
 0x3e0   : > { %3632 = vrcp.f32 %v2524_v24  ;;  %v2366_v9 = vpop.f32.mrf.mxu3  ;;  %v2300_v24 = vpop.f32.mrf.mxu2 }
 0x3e1   : > { %v2367_v28 = vadd.f32 %v2366_v9, %v2278_v39 }
 0x3e3   : > { %v2430_v57 = vsub.f32 0.0, %v2367_v28 }
 0x3e5   : > { %v3631_v22 = vpop.eup %3630  ;;  %v2473_v20 = vmul.f32 1.442695, %v2430_v57  ;;  %2408 = vmatmul.bf16.gmra.mxu3 %v3252_v13 }
 0x3e6   : > { %v3633_v45 = vpop.eup %3632  ;;  %v2525_v62 = vadd.f32 1.0, %v3631_v22 }
 0x3e7   : > { %2588 = vst [vmem:[%s4794_s23 + $0x48] sm:$0xff] %v3633_v45  ;;  %3634 = vpow2.f32 %v2473_v20  ;;  %v2014_v20 = vpop.permute.xlu2 %2013 }
 0x3e8   : > { %3636 = vrcp.f32 %v2525_v62  ;;  %v2369_v25 = vpop.f32.mrf.mxu3  ;;  %v2296_v42 = vadd.f32 %v2295_v26, %v2014_v20  ;;  %v2302_v38 = vpop.f32.mrf.mxu2 }
 0x3e9   : > { %v2370_v27 = vadd.f32 %v2369_v25, %v2281_v60 }
 0x3eb   : > { %v2431_v47 = vsub.f32 0.0, %v2370_v27 }
 0x3ed   : > { %v3635_v54 = vpop.eup %3634  ;;  %v2475_v36 = vmul.f32 1.442695, %v2431_v47 }
 0x3ee   : > { %v3637_v1 = vpop.eup %3636  ;;  %v2526_v48 = vadd.f32 1.0, %v3635_v54 }
 0x3ef   : > { %2589 = vst [vmem:[%s4794_s23 + $0x50] sm:$0xff] %v3637_v1  ;;  %3638 = vpow2.f32 %v2475_v36  ;;  %v2019_v36 = vpop.permute.xlu0 %2018  ;;  %v2029_v26 = vpop.permute.xlu2 %2028 }
 0x3f0   : > { %3640 = vrcp.f32 %v2526_v48  ;;  %v2371_v12 = vpop.f32.mrf.mxu3  ;;  %v2298_v32 = vadd.f32 %v2297_v34, %v2019_v36  ;;  %v2305_v14 = vpop.f32.mrf.mxu2 }
 0x3f1   : > { %v2372_v17 = vadd.f32 %v2371_v12, %v2283_v55 }
 0x3f3   : > { %v2432_v51 = vsub.f32 0.0, %v2372_v17 }
 0x3f5   : > { %v3639_v18 = vpop.eup %3638  ;;  %v2477_v37 = vmul.f32 1.442695, %v2432_v51  ;;  %2413 = vmatmul.bf16.gmra.mxu3 %v3260_v5  ;;  %v2024_v5 = vpop.permute.xlu1 %2023 }
 0x3f6   : > { %v3641_v49 = vpop.eup %3640  ;;  %v2527_v53 = vadd.f32 1.0, %v3639_v18  ;;  %v2301_v18 = vadd.f32 %v2300_v24, %v2024_v5 }
 0x3f7   : > { %2590 = vst [vmem:[%s4794_s23 + $0x58] sm:$0xff] %v3641_v49  ;;  %3642 = vpow2.f32 %v2477_v37 }
 0x3f8   : > { %3644 = vrcp.f32 %v2527_v53  ;;  %v2374_v16 = vpop.f32.mrf.mxu3  ;;  %v2307_v53 = vpop.f32.mrf.mxu2 }
 0x3f9   : > { %v2375_v19 = vadd.f32 %v2374_v16, %v2286_v6 }
 0x3fb   : > { %v2433_v11 = vsub.f32 0.0, %v2375_v19 }
 0x3fd   : > { %v3643_v33 = vpop.eup %3642  ;;  %v2479_v10 = vmul.f32 1.442695, %v2433_v11 }
 0x3fe   : > { %v3645_v63 = vpop.eup %3644  ;;  %v2528_v52 = vadd.f32 1.0, %v3643_v33  ;;  %v2303_v33 = vadd.f32 %v2302_v38, %v2029_v26 }
 0x3ff   : > { %2591 = vst [vmem:[%s4794_s23 + $0x60] sm:$0xff] %v3645_v63  ;;  %3646 = vpow2.f32 %v2479_v10 }
 0x400   : > { %3648 = vrcp.f32 %v2528_v52  ;;  %v2376_v21 = vpop.f32.mrf.mxu3 }
 0x401   : > { %v2377_v31 = vadd.f32 %v2376_v21, %v2288_v3 }
 0x403   : > { %v2434_v40 = vsub.f32 0.0, %v2377_v31  ;;  %v2034_v31 = vpop.permute.xlu0 %2033 }
 0x405   : > { %v3647_v61 = vpop.eup %3646  ;;  %v2481_v44 = vmul.f32 1.442695, %v2434_v40  ;;  %v2310_v40 = vpop.f32.mrf.mxu2 }
 0x406   : > { %v3649_v30 = vpop.eup %3648  ;;  %v2529_v8 = vadd.f32 1.0, %v3647_v61  ;;  %v2306_v61 = vadd.f32 %v2305_v14, %v2034_v31 }
 0x407   : > { %2592 = vst [vmem:[%s4794_s23 + $0x68] sm:$0xff] %v3649_v30  ;;  %3650 = vpow2.f32 %v2481_v44 }
 0x408   : > { %3652 = vrcp.f32 %v2529_v8  ;;  %v2379_v7 = vpop.f32.mrf.mxu3 }
 0x409   : > { %v2380_v4 = vadd.f32 %v2379_v7, %v2291_v50 }
 0x40b   : > { %v2435_v2 = vsub.f32 0.0, %v2380_v4  ;;  %v2039_v4 = vpop.permute.xlu1 %2038 }
 0x40d   : > { %v3651_v29 = vpop.eup %3650  ;;  %v2483_v0 = vmul.f32 1.442695, %v2435_v2 }
 0x40e   : > { %v3653_v15 = vpop.eup %3652  ;;  %v2530_v23 = vadd.f32 1.0, %v3651_v29  ;;  %v2308_v29 = vadd.f32 %v2307_v53, %v2039_v4 }
 0x40f   : > { %2593 = vst [vmem:[%s4794_s23 + $0x70] sm:$0xff] %v3653_v15  ;;  %3654 = vpow2.f32 %v2483_v0  ;;  %v2312_v0 = vpop.f32.mrf.mxu2 }
 0x410   : > { %3656 = vrcp.f32 %v2530_v23  ;;  %v2381_v39 = vpop.f32.mrf.mxu3 }
 0x411   : > { %v2382_v9 = vadd.f32 %v2381_v39, %v2293_v59 }
 0x413   : > { %v2436_v28 = vsub.f32 0.0, %v2382_v9  ;;  %v2044_v9 = vpop.permute.xlu2 %2043  ;;  %v2054_v14 = vpop.permute.xlu1 %2053 }
 0x415   : > { %v3655_v13 = vpop.eup %3654  ;;  %v2485_v57 = vmul.f32 1.442695, %v2436_v28 }
 0x416   : > { %v3657_v22 = vpop.eup %3656  ;;  %v2531_v45 = vadd.f32 1.0, %v3655_v13  ;;  %v2311_v13 = vadd.f32 %v2310_v40, %v2044_v9 }
 0x417   : > { %2594 = vst [vmem:[%s4794_s23 + $0x78] sm:$0xff] %v3657_v22  ;;  %3658 = vpow2.f32 %v2485_v57  ;;  %v2315_v20 = vpop.f32.mrf.mxu2 }
 0x418   : > { %3660 = vrcp.f32 %v2531_v45  ;;  %v2384_v62 = vpop.f32.mrf.mxu3 }
 0x419   : > { %v2385_v60 = vadd.f32 %v2384_v62, %v2296_v42 }
 0x41b   : > { %v2437_v25 = vsub.f32 0.0, %v2385_v60  ;;  %v2049_v60 = vpop.permute.xlu0 %2048 }
 0x41d   : > { %v3659_v27 = vpop.eup %3658  ;;  %v2487_v47 = vmul.f32 1.442695, %v2437_v25 }
 0x41e   : > { %v3661_v54 = vpop.eup %3660  ;;  %v2532_v1 = vadd.f32 1.0, %v3659_v27  ;;  %v2313_v27 = vadd.f32 %v2312_v0, %v2049_v60 }
 0x41f   : > { %2595 = vst [vmem:[%s4794_s23 + $0x80] sm:$0xff] %v3661_v54  ;;  %3662 = vpow2.f32 %v2487_v47 }
 0x420   : > { %3664 = vrcp.f32 %v2532_v1  ;;  %v2386_v48 = vpop.f32.mrf.mxu3  ;;  %v2317_v1 = vpop.f32.mrf.mxu2 }
 0x421   : > { %v2387_v41 = vadd.f32 %v2386_v48, %v2298_v32 }
 0x423   : > { %v2438_v55 = vsub.f32 0.0, %v2387_v41 }
 0x425   : > { %v3663_v43 = vpop.eup %3662  ;;  %v2489_v12 = vmul.f32 1.442695, %v2438_v55 }
 0x426   : > { %v3665_v17 = vpop.eup %3664  ;;  %v2533_v51 = vadd.f32 1.0, %v3663_v43  ;;  %v2316_v43 = vadd.f32 %v2315_v20, %v2054_v14 }
 0x427   : > { %2596 = vst [vmem:[%s4794_s23 + $0x88] sm:$0xff] %v3665_v17  ;;  %3666 = vpow2.f32 %v2489_v12 }
 0x428   : > { %3668 = vrcp.f32 %v2533_v51  ;;  %v2389_v37 = vpop.f32.mrf.mxu3 }
 0x429   : > { %v2390_v49 = vadd.f32 %v2389_v37, %v2301_v18 }
 0x42b   : > { %v2439_v46 = vsub.f32 0.0, %v2390_v49  ;;  %v2059_v49 = vpop.permute.xlu2 %2058 }
 0x42d   : > { %v3667_v6 = vpop.eup %3666  ;;  %v2491_v16 = vmul.f32 1.442695, %v2439_v46  ;;  %v2320_v46 = vpop.f32.mrf.mxu2 }
 0x42e   : > { %v3669_v19 = vpop.eup %3668  ;;  %v2534_v11 = vadd.f32 1.0, %v3667_v6  ;;  %v2318_v6 = vadd.f32 %v2317_v1, %v2059_v49 }
 0x42f   : > { %2597 = vst [vmem:[%s4794_s23 + $0x90] sm:$0xff] %v3669_v19  ;;  %3670 = vpow2.f32 %v2491_v16 }
 0x430   : > { %3672 = vrcp.f32 %v2534_v11  ;;  %v2391_v10 = vpop.f32.mrf.mxu3 }
 0x431   : > { %v2392_v63 = vadd.f32 %v2391_v10, %v2303_v33 }
 0x433   : > { %v2440_v35 = vsub.f32 0.0, %v2392_v63  ;;  %v2064_v63 = vpop.permute.xlu0 %2063 }
 0x435   : > { %v3671_v52 = vpop.eup %3670  ;;  %v2493_v3 = vmul.f32 1.442695, %v2440_v35 }
 0x436   : > { %v3673_v21 = vpop.eup %3672  ;;  %v2535_v34 = vadd.f32 1.0, %v3671_v52  ;;  %v2321_v52 = vadd.f32 %v2320_v46, %v2064_v63 }
 0x437   : > { %2598 = vst [vmem:[%s4794_s23 + $0x98] sm:$0xff] %v3673_v21  ;;  %3674 = vpow2.f32 %v2493_v3  ;;  %v2322_v3 = vpop.f32.mrf.mxu2 }
 0x438   : > { %3676 = vrcp.f32 %v2535_v34  ;;  %v2394_v44 = vpop.f32.mrf.mxu3 }
 0x439   : > { %v2395_v30 = vadd.f32 %v2394_v44, %v2306_v61 }
 0x43b   : > { %v2441_v56 = vsub.f32 0.0, %v2395_v30  ;;  %v2069_v30 = vpop.permute.xlu1 %2068  ;;  %v2079_v20 = vpop.permute.xlu0 %2078 }
 0x43d   : > { %v3675_v8 = vpop.eup %3674  ;;  %v2495_v50 = vmul.f32 1.442695, %v2441_v56 }
 0x43e   : > { %v3677_v7 = vpop.eup %3676  ;;  %v2536_v2 = vadd.f32 1.0, %v3675_v8  ;;  %v2323_v8 = vadd.f32 %v2322_v3, %v2069_v30 }
 0x43f   : > { %2599 = vst [vmem:[%s4794_s23 + $0xa0] sm:$0xff] %v3677_v7  ;;  %3678 = vpow2.f32 %v2495_v50  ;;  %v2325_v4 = vpop.f32.mrf.mxu2 }
 0x440   : > { %3680 = vrcp.f32 %v2536_v2  ;;  %v2396_v15 = vpop.f32.mrf.mxu3 }
 0x441   : > { %v2397_v58 = vadd.f32 %v2396_v15, %v2308_v29 }
 0x443   : > { %v2442_v24 = vsub.f32 0.0, %v2397_v58  ;;  %v2074_v58 = vpop.permute.xlu2 %2073 }
 0x445   : > { %v3679_v23 = vpop.eup %3678  ;;  %v2497_v59 = vmul.f32 1.442695, %v2442_v24 }
 0x446   : > { %v3681_v39 = vpop.eup %3680  ;;  %v2537_v28 = vadd.f32 1.0, %v3679_v23  ;;  %v2326_v23 = vadd.f32 %v2325_v4, %v2074_v58 }
 0x447   : > { %2600 = vst [vmem:[%s4794_s23 + $0xa8] sm:$0xff] %v3681_v39  ;;  %3682 = vpow2.f32 %v2497_v59 }
 0x448   : > { %3684 = vrcp.f32 %v2537_v28  ;;  %v2399_v57 = vpop.f32.mrf.mxu3  ;;  %v2327_v28 = vpop.f32.mrf.mxu2 }
 0x449   : > { %v2400_v22 = vadd.f32 %v2399_v57, %v2311_v13 }
 0x44b   : > { %v2443_v45 = vsub.f32 0.0, %v2400_v22 }
 0x44d   : > { %v3683_v42 = vpop.eup %3682  ;;  %v2499_v38 = vmul.f32 1.442695, %v2443_v45 }
 0x44e   : > { %v3685_v62 = vpop.eup %3684  ;;  %v2538_v25 = vadd.f32 1.0, %v3683_v42  ;;  %v2328_v42 = vadd.f32 %v2327_v28, %v2079_v20 }
 0x44f   : > { %2601 = vst [vmem:[%s4794_s23 + $0xb0] sm:$0xff] %v3685_v62  ;;  %3686 = vpow2.f32 %v2499_v38 }
 0x450   : > { %3688 = vrcp.f32 %v2538_v25  ;;  %v2401_v47 = vpop.f32.mrf.mxu3 }
 0x451   : > { %v2402_v54 = vadd.f32 %v2401_v47, %v2313_v27 }
 0x453   : > { %v2444_v36 = vsub.f32 0.0, %v2402_v54 }
 0x455   : > { %v3687_v32 = vpop.eup %3686  ;;  %v2501_v48 = vmul.f32 1.442695, %v2444_v36 }
 0x456   : > { %v3689_v41 = vpop.eup %3688  ;;  %v2539_v55 = vadd.f32 1.0, %v3687_v32 }
 0x457   : > { %2602 = vst [vmem:[%s4794_s23 + $0xb8] sm:$0xff] %v3689_v41  ;;  %3690 = vpow2.f32 %v2501_v48 }
 0x458   : > { %3692 = vrcp.f32 %v2539_v55  ;;  %v2404_v12 = vpop.f32.mrf.mxu3 }
 0x459   : > { %v2405_v17 = vadd.f32 %v2404_v12, %v2316_v43 }
 0x45b   : > { %v2445_v5 = vsub.f32 0.0, %v2405_v17 }
 0x45d   : > { %v3691_v51 = vpop.eup %3690  ;;  %v2503_v18 = vmul.f32 1.442695, %v2445_v5 }
 0x45e   : > { %v3693_v37 = vpop.eup %3692  ;;  %v2540_v53 = vadd.f32 1.0, %v3691_v51 }
 0x45f   : > { %2603 = vst [vmem:[%s4794_s23 + $0xc0] sm:$0xff] %v3693_v37  ;;  %3694 = vpow2.f32 %v2503_v18 }
 0x460   : > { %3696 = vrcp.f32 %v2540_v53  ;;  %v2406_v16 = vpop.f32.mrf.mxu3 }
 0x461   : > { %v2407_v19 = vadd.f32 %v2406_v16, %v2318_v6 }
 0x463   : > { %v2446_v26 = vsub.f32 0.0, %v2407_v19 }
 0x465   : > { %v3695_v11 = vpop.eup %3694  ;;  %v2505_v33 = vmul.f32 1.442695, %v2446_v26 }
 0x466   : > { %v3697_v10 = vpop.eup %3696  ;;  %v2541_v35 = vadd.f32 1.0, %v3695_v11 }
 0x467   : > { %2604 = vst [vmem:[%s4794_s23 + $0xc8] sm:$0xff] %v3697_v10  ;;  %3698 = vpow2.f32 %v2505_v33 }
 0x468   : > { %3700 = vrcp.f32 %v2541_v35  ;;  %v2409_v21 = vpop.f32.mrf.mxu3 }
 0x469   : > { %v2410_v31 = vadd.f32 %v2409_v21, %v2321_v52 }
 0x46b   : > { %v2447_v40 = vsub.f32 0.0, %v2410_v31 }
 0x46d   : > { %v3699_v34 = vpop.eup %3698  ;;  %v2507_v61 = vmul.f32 1.442695, %v2447_v40 }
 0x46e   : > { %v3701_v44 = vpop.eup %3700  ;;  %v2542_v56 = vadd.f32 1.0, %v3699_v34 }
 0x46f   : > { %2605 = vst [vmem:[%s4794_s23 + $0xd0] sm:$0xff] %v3701_v44  ;;  %3702 = vpow2.f32 %v2507_v61 }
 0x470   : > { %3704 = vrcp.f32 %v2542_v56  ;;  %v2411_v50 = vpop.f32.mrf.mxu3 }
 0x471   : > { %v2412_v7 = vadd.f32 %v2411_v50, %v2323_v8 }
 0x473   : > { %v2448_v2 = vsub.f32 0.0, %v2412_v7 }
 0x475   : > { %v3703_v29 = vpop.eup %3702  ;;  %v2509_v0 = vmul.f32 1.442695, %v2448_v2 }
 0x476   : > { %v3705_v15 = vpop.eup %3704  ;;  %v2543_v24 = vadd.f32 1.0, %v3703_v29 }
 0x477   : > { %2606 = vst [vmem:[%s4794_s23 + $0xd8] sm:$0xff] %v3705_v15  ;;  %3706 = vpow2.f32 %v2509_v0 }
 0x478   : > { %3708 = vrcp.f32 %v2543_v24  ;;  %v2414_v59 = vpop.f32.mrf.mxu3 }
 0x479   : > { %v2415_v39 = vadd.f32 %v2414_v59, %v2326_v23 }
 0x47b   : > { %v2449_v9 = vsub.f32 0.0, %v2415_v39 }
 0x47d   : > { %v3707_v13 = vpop.eup %3706  ;;  %v2511_v57 = vmul.f32 1.442695, %v2449_v9 }
 0x47e   : > { %v3709_v22 = vpop.eup %3708  ;;  %v2544_v45 = vadd.f32 1.0, %v3707_v13 }
 0x47f   : > { %2607 = vst [vmem:[%s4794_s23 + $0xe0] sm:$0xff] %v3709_v22  ;;  %3710 = vpow2.f32 %v2511_v57 }
 0x480   : > { %3712 = vrcp.f32 %v2544_v45  ;;  %v2416_v38 = vpop.f32.mrf.mxu3 }
 0x481   : > { %v2417_v62 = vadd.f32 %v2416_v38, %v2328_v42 }
 0x483   : > { %v2450_v60 = vsub.f32 0.0, %v2417_v62 }
 0x485   : > { %v3711_v25 = vpop.eup %3710  ;;  %v2513_v27 = vmul.f32 1.442695, %v2450_v60 }
 0x486   : > { %v3713_v47 = vpop.eup %3712  ;;  %v2545_v54 = vadd.f32 1.0, %v3711_v25 }
 0x487   : > { %2608 = vst [vmem:[%s4794_s23 + $0xe8] sm:$0xff] %v3713_v47  ;;  %3714 = vpow2.f32 %v2513_v27 }
 0x488   : > { %3716 = vrcp.f32 %v2545_v54 }
 0x48d   : > { %v3715_v36 = vpop.eup %3714 }
 0x48e   : > { %v3717_v1 = vpop.eup %3716  ;;  %v2546_v32 = vadd.f32 1.0, %v3715_v36 }
 0x48f   : > { %2609 = vst [vmem:[%s4794_s23 + $0xf0] sm:$0xff] %v3717_v1 }
 0x490   : > { %3718 = vrcp.f32 %v2546_v32 }
 0x496   : > { %v3719_v48 = vpop.eup %3718 }
 0x497   : > { %2610 = vst [vmem:[%s4794_s23 + $0xf8] sm:$0xff] %v3719_v48 }
 0x498   : > { %3807 = shalt.err (!%p3804_p10)
}
 0x499   : > { %s3859_s25 = smov 128   ;;  %s3860_s23 = smov 256  }
 0x49a   : > { %s3861_s27 = smov 8  }
 0x49b   : > { %3401 = dma.vmem_to_hbm [thread:$0]  (%p3954_p7), %s2624_s10, 4096, %s2626_s12, %s2612_s20, %s3859_s25, %s3860_s23, %s3861_s27  }
 0x49c PF: > { %s2640_s28 = sand.u32 1, %s3838_s15   ;;  %p4944_p12 = scmp.ge.s32.totalorder %s3850_s18, 2 }
 0x49d   : > { %s2641_s7 = scalar_lea.sflag [#allocation4], %s2640_s28 }
 0x49e   : > { %p3412_p13 = pnand %p4944_p12, %p3922_p6 }
 0x4a0   : > { %p3413_p0 = pneg %p3412_p13 }
 0x4a2   : > { %3833 = dma.done.wait (%p3413_p0), %s2641_s7, 4096  }
 0x4a3   : > { %3835 = vsyncadd (%p3413_p0), %s2641_s7, 4294963200  ;;  %p18_p3 = scmp.ge.s32.totalorder %s3940_s29, 4   ;;  %s4945_s15 = smov %s3842_s16 }
 0x4a4   : > { %s4946_s16 = smov %s3846_s17  ;;  %s4947_s17 = smov %s3950_s8 }
 0x4a5   : > { %s4948_s18 = smov %s3940_s29  ;;  %20 = sbr.rel (!%p18_p3) target bundleno = 6 (0x6), region = 86 }
 0x4aa   :  { %2647 = vsyncpa [#allocation3], 1 }
 0x4ab   :  { %2649 = vsyncpa [#allocation3 + $0x1], 1 }
 0x4ac   :  { %2650 = vsyncpa [#allocation6], 1 }
 0x4ad   :  { %2651 = vsyncpa [#allocation4], 1 }
 0x4ae   :  { %2653 = vsyncpa [#allocation4 + $0x1], 1 }

</bundles_post_ra>
